<compile_context>
chip_gen: v7x
topology: tpu7x:2x2x1
jax: 0.10.0
libtpu: 0.0.40
codegen_flags: <defaults>
</compile_context>

<pallas_src>
import functools

import jax
import jax.numpy as jnp
from jax.experimental import pallas as pl
from jax.experimental.pallas import tpu as pltpu

K_IN = 784        # MNIST input width (no contraction-dim padding; Mosaic handles K=784 internally)
H_PAD = 128       # hidden widths 64/32/32 and the 10-wide output padded to one vreg lane width
N_OUT = 10
NEG_PAD = -1e30   # finite large-negative bias for padded output lanes (exact log_softmax, no NaN)

COMPUTE_DTYPE = jnp.bfloat16   # MXU input dtype; accumulation stays float32


def ffn_mnist_kernel(x_ref,
                     w1_ref, b1_ref,
                     w2_ref, b2_ref,
                     w3_ref, b3_ref,
                     w4_ref, b4_ref,
                     o_ref):
    # In-kernel cast f32 -> bf16 (moves the cast off the HBM path; input DMA stays 784 lanes).
    x = x_ref[...].astype(COMPUTE_DTYPE)
    # Layer 1: Linear(784 -> 128-padded 64) + ReLU (zero padding is ReLU-stable -> exact)
    h = jnp.dot(x, w1_ref[...], preferred_element_type=jnp.float32)
    h = jnp.maximum(h + b1_ref[...], 0.0).astype(COMPUTE_DTYPE)
    # Layer 2: Linear(64 -> 32), padded to 128x128
    h = jnp.dot(h, w2_ref[...], preferred_element_type=jnp.float32)
    h = jnp.maximum(h + b2_ref[...], 0.0).astype(COMPUTE_DTYPE)
    # Layer 3: Linear(32 -> 32), padded to 128x128
    h = jnp.dot(h, w3_ref[...], preferred_element_type=jnp.float32)
    h = jnp.maximum(h + b3_ref[...], 0.0).astype(COMPUTE_DTYPE)
    # Output layer: Linear(32 -> 10), padded to 128 output lanes. Padded lanes get a finite
    # large-negative bias, so max/sum of the 128-lane log_softmax are exact for the true 10 lanes.
    logits = jnp.dot(h, w4_ref[...], preferred_element_type=jnp.float32) + b4_ref[...]
    m = jnp.max(logits, axis=-1, keepdims=True)
    shifted = logits - m
    lse = jnp.log(jnp.sum(jnp.exp(shifted), axis=-1, keepdims=True))
    # Lane-dense (block_b, 128) store -> unmasked vst, wide DMA. Wrapper slices back to 10.
    o_ref[...] = shifted - lse


def _round_up(x, m):
    return ((x + m - 1) // m) * m


def _choose_block_b(batch, target):
    # Largest tile <= target that still gives >= 2 grid steps when the batch allows it
    # (v7x megacore needs >= 2 steps on the "parallel" axis); rows kept a multiple of 8.
    half = _round_up(pl.cdiv(batch, 2), 8)
    return max(8, min(target, half))


@functools.partial(jax.jit, static_argnames=("block_b_target",))
def ffn_mnist_forward(x, params, *, block_b_target=1024):
    """x: [B, 784] float32. params: padded bf16 weights ([in,out]) + f32 biases ([1,out])."""
    B = x.shape[0]
    block_b = _choose_block_b(B, block_b_target)
    n_blocks = pl.cdiv(B, block_b)
    b_pad = n_blocks * block_b

    # Only the ragged remainder (if any) is padded; the common path streams x untouched.
    x_in = x if b_pad == B else jnp.pad(x, ((0, b_pad - B), (0, 0)))

    args = (x_in,
            params["w1"], params["b1"],
            params["w2"], params["b2"],
            params["w3"], params["b3"],
            params["w4"], params["b4"])

    # Activation tile streams over the batch grid; weights/biases use constant index_maps so
    # Pallas keeps them resident in VMEM across grid steps (no re-DMA).
    in_specs = [pl.BlockSpec((block_b, K_IN), lambda i: (i, 0))]
    in_specs += [pl.BlockSpec(a.shape, lambda i: (0, 0)) for a in args[1:]]
    out_spec = pl.BlockSpec((block_b, H_PAD), lambda i: (i, 0))

    weight_bytes = sum(int(a.size) * a.dtype.itemsize for a in args[1:])
    cost = pl.CostEstimate(
        flops=2 * b_pad * (K_IN * H_PAD + 3 * H_PAD * H_PAD),
        transcendentals=b_pad * (H_PAD + 1),
        bytes_accessed=b_pad * K_IN * 4 + b_pad * H_PAD * 4 + weight_bytes,
    )

    out = pl.pallas_call(
        ffn_mnist_kernel,
        out_shape=jax.ShapeDtypeStruct((b_pad, H_PAD), jnp.float32),
        grid=(n_blocks,),
        in_specs=in_specs,
        out_specs=out_spec,
        compiler_params=pltpu.CompilerParams(
            dimension_semantics=("parallel",)),   # v7x: batch axis across both TensorCores
        cost_estimate=cost,
    )(*args)
    return out[:B, :N_OUT]


def init_params(key):
    """PyTorch-default-style init, stored transposed [in, out] and zero-padded to lane-aligned
    shapes. Zero padding is ReLU-stable; the output layer's padded lanes use a finite large
    negative bias so the 128-lane log_softmax is exact on the true 10 logits."""
    true_dims = [(K_IN, 64), (64, 32), (32, 32), (32, N_OUT)]
    pad_dims = [(K_IN, H_PAD), (H_PAD, H_PAD), (H_PAD, H_PAD), (H_PAD, H_PAD)]
    params = {}
    keys = jax.random.split(key, 2 * len(true_dims))
    for i, ((fi, fo), (pi, po)) in enumerate(zip(true_dims, pad_dims)):
        bound = 1.0 / (fi ** 0.5)
        w = jax.random.uniform(keys[2 * i], (fi, fo),
                               minval=-bound, maxval=bound, dtype=jnp.float32)
        b = jax.random.uniform(keys[2 * i + 1], (1, fo),
                               minval=-bound, maxval=bound, dtype=jnp.float32)
        w_p = jnp.zeros((pi, po), dtype=COMPUTE_DTYPE).at[:fi, :fo].set(
            w.astype(COMPUTE_DTYPE))
        is_last = (i == len(true_dims) - 1)
        fill = NEG_PAD if is_last else 0.0
        b_p = jnp.full((1, po), fill, dtype=jnp.float32).at[:, :fo].set(b)
        params[f"w{i + 1}"] = w_p
        params[f"b{i + 1}"] = b_p
    return params


def reference_forward(x, params):
    """Plain-JAX reference on the true (unpadded) weight slices, same bf16/f32 math."""
    w1 = params["w1"][:, :64];        b1 = params["b1"][:, :64]
    w2 = params["w2"][:64, :32];      b2 = params["b2"][:, :32]
    w3 = params["w3"][:32, :32];      b3 = params["b3"][:, :32]
    w4 = params["w4"][:32, :N_OUT];   b4 = params["b4"][:, :N_OUT]
    h = x.astype(COMPUTE_DTYPE)
    h = jnp.maximum(jnp.dot(h, w1, preferred_element_type=jnp.float32) + b1,
                    0.0).astype(COMPUTE_DTYPE)
    h = jnp.maximum(jnp.dot(h, w2, preferred_element_type=jnp.float32) + b2,
                    0.0).astype(COMPUTE_DTYPE)
    h = jnp.maximum(jnp.dot(h, w3, preferred_element_type=jnp.float32) + b3,
                    0.0).astype(COMPUTE_DTYPE)
    logits = jnp.dot(h, w4, preferred_element_type=jnp.float32) + b4
    return jax.nn.log_softmax(logits, axis=1)


if __name__ == "__main__":
    key = jax.random.PRNGKey(0)
    k_params, k_x = jax.random.split(key)
    params = init_params(k_params)

    # Multi-tile batch — block_b clips to 128 here, giving 2 grid steps (exercises pipelining
    # and the v7x megacore sharding path).
    B = 256
    x = jax.random.normal(k_x, (B, K_IN), dtype=jnp.float32)
    out = jax.block_until_ready(ffn_mnist_forward(x, params))
    ref = reference_forward(x, params)
    assert out.shape == (B, N_OUT)
    assert jnp.allclose(out, ref, atol=1e-3, rtol=1e-3), "mismatch vs reference (B=256)"

    # Tiny-batch path (single 8-row tile, no batch padding needed).
    x_small = x[:8]
    out_small = jax.block_until_ready(ffn_mnist_forward(x_small, params))
    ref_small = reference_forward(x_small, params)
    assert out_small.shape == (8, N_OUT)
    assert jnp.allclose(out_small, ref_small, atol=1e-3, rtol=1e-3), "mismatch (B=8)"

    print("KERNEL_OK")
</pallas_src>

<mosaic_0001>
module attributes {stable_mosaic.version = 11 : i64} {
  func.func @ffn_mnist_kernel(%arg0: i32, %arg1: memref<128x784xf32, #tpu.memory_space<vmem>>, %arg2: memref<784x128xbf16, #tpu.memory_space<vmem>>, %arg3: memref<1x128xf32, #tpu.memory_space<vmem>>, %arg4: memref<128x128xbf16, #tpu.memory_space<vmem>>, %arg5: memref<1x128xf32, #tpu.memory_space<vmem>>, %arg6: memref<128x128xbf16, #tpu.memory_space<vmem>>, %arg7: memref<1x128xf32, #tpu.memory_space<vmem>>, %arg8: memref<128x128xbf16, #tpu.memory_space<vmem>>, %arg9: memref<1x128xf32, #tpu.memory_space<vmem>>, %arg10: memref<128x128xf32, #tpu.memory_space<vmem>>) attributes {dimension_semantics = [#tpu.dimension_semantics<parallel>], iteration_bounds = array<i64: 2>, scalar_prefetch = 0 : i64, scratch_operands = 0 : i64, tpu.core_type = #tpu.core_type<tc>, window_params = [{transform_indices = @transform_0, window_bounds = array<i64: 128, 784>}, {pipeline_mode = #tpu.pipeline_mode<synchronous>, transform_indices = @transform_1, window_bounds = array<i64: 784, 128>}, {pipeline_mode = #tpu.pipeline_mode<synchronous>, transform_indices = @transform_2, window_bounds = array<i64: 1, 128>}, {pipeline_mode = #tpu.pipeline_mode<synchronous>, transform_indices = @transform_3, window_bounds = array<i64: 128, 128>}, {pipeline_mode = #tpu.pipeline_mode<synchronous>, transform_indices = @transform_4, window_bounds = array<i64: 1, 128>}, {pipeline_mode = #tpu.pipeline_mode<synchronous>, transform_indices = @transform_5, window_bounds = array<i64: 128, 128>}, {pipeline_mode = #tpu.pipeline_mode<synchronous>, transform_indices = @transform_6, window_bounds = array<i64: 1, 128>}, {pipeline_mode = #tpu.pipeline_mode<synchronous>, transform_indices = @transform_7, window_bounds = array<i64: 128, 128>}, {pipeline_mode = #tpu.pipeline_mode<synchronous>, transform_indices = @transform_8, window_bounds = array<i64: 1, 128>}, {transform_indices = @transform_9, window_bounds = array<i64: 128, 128>}]} {
    %c0 = arith.constant 0 : index
    %c0_0 = arith.constant 0 : index
    %0 = vector.load %arg1[%c0, %c0_0] : memref<128x784xf32, #tpu.memory_space<vmem>>, vector<128x784xf32>
    %1 = arith.truncf %0 : vector<128x784xf32> to vector<128x784xbf16>
    %c0_1 = arith.constant 0 : index
    %c0_2 = arith.constant 0 : index
    %2 = vector.load %arg2[%c0_1, %c0_2] : memref<784x128xbf16, #tpu.memory_space<vmem>>, vector<784x128xbf16>
    %cst = arith.constant dense<0.000000e+00> : vector<128x128xf32>
    %3 = tpu.matmul %1, %2, %cst {dimension_numbers = #tpu.dot_dimension_numbers<[1], [0], [0], [1], [0, 0, 1, 1], [], []>} : vector<128x784xbf16>, vector<784x128xbf16>, vector<128x128xf32> -> vector<128x128xf32>
    %c0_3 = arith.constant 0 : index
    %c0_4 = arith.constant 0 : index
    %4 = vector.load %arg3[%c0_3, %c0_4] : memref<1x128xf32, #tpu.memory_space<vmem>>, vector<1x128xf32>
    %5 = vector.broadcast %4 : vector<1x128xf32> to vector<128x128xf32>
    %6 = arith.addf %3, %5 : vector<128x128xf32>
    %cst_5 = arith.constant 0.000000e+00 : f32
    %7 = vector.broadcast %cst_5 : f32 to vector<128x128xf32>
    %8 = arith.maximumf %6, %7 : vector<128x128xf32>
    %9 = arith.truncf %8 : vector<128x128xf32> to vector<128x128xbf16>
    %c0_6 = arith.constant 0 : index
    %c0_7 = arith.constant 0 : index
    %10 = vector.load %arg4[%c0_6, %c0_7] : memref<128x128xbf16, #tpu.memory_space<vmem>>, vector<128x128xbf16>
    %cst_8 = arith.constant dense<0.000000e+00> : vector<128x128xf32>
    %11 = tpu.matmul %9, %10, %cst_8 {dimension_numbers = #tpu.dot_dimension_numbers<[1], [0], [0], [1], [0, 0, 1, 1], [], []>} : vector<128x128xbf16>, vector<128x128xbf16>, vector<128x128xf32> -> vector<128x128xf32>
    %c0_9 = arith.constant 0 : index
    %c0_10 = arith.constant 0 : index
    %12 = vector.load %arg5[%c0_9, %c0_10] : memref<1x128xf32, #tpu.memory_space<vmem>>, vector<1x128xf32>
    %13 = vector.broadcast %12 : vector<1x128xf32> to vector<128x128xf32>
    %14 = arith.addf %11, %13 : vector<128x128xf32>
    %cst_11 = arith.constant 0.000000e+00 : f32
    %15 = vector.broadcast %cst_11 : f32 to vector<128x128xf32>
    %16 = arith.maximumf %14, %15 : vector<128x128xf32>
    %17 = arith.truncf %16 : vector<128x128xf32> to vector<128x128xbf16>
    %c0_12 = arith.constant 0 : index
    %c0_13 = arith.constant 0 : index
    %18 = vector.load %arg6[%c0_12, %c0_13] : memref<128x128xbf16, #tpu.memory_space<vmem>>, vector<128x128xbf16>
    %cst_14 = arith.constant dense<0.000000e+00> : vector<128x128xf32>
    %19 = tpu.matmul %17, %18, %cst_14 {dimension_numbers = #tpu.dot_dimension_numbers<[1], [0], [0], [1], [0, 0, 1, 1], [], []>} : vector<128x128xbf16>, vector<128x128xbf16>, vector<128x128xf32> -> vector<128x128xf32>
    %c0_15 = arith.constant 0 : index
    %c0_16 = arith.constant 0 : index
    %20 = vector.load %arg7[%c0_15, %c0_16] : memref<1x128xf32, #tpu.memory_space<vmem>>, vector<1x128xf32>
    %21 = vector.broadcast %20 : vector<1x128xf32> to vector<128x128xf32>
    %22 = arith.addf %19, %21 : vector<128x128xf32>
    %cst_17 = arith.constant 0.000000e+00 : f32
    %23 = vector.broadcast %cst_17 : f32 to vector<128x128xf32>
    %24 = arith.maximumf %22, %23 : vector<128x128xf32>
    %25 = arith.truncf %24 : vector<128x128xf32> to vector<128x128xbf16>
    %c0_18 = arith.constant 0 : index
    %c0_19 = arith.constant 0 : index
    %26 = vector.load %arg8[%c0_18, %c0_19] : memref<128x128xbf16, #tpu.memory_space<vmem>>, vector<128x128xbf16>
    %cst_20 = arith.constant dense<0.000000e+00> : vector<128x128xf32>
    %27 = tpu.matmul %25, %26, %cst_20 {dimension_numbers = #tpu.dot_dimension_numbers<[1], [0], [0], [1], [0, 0, 1, 1], [], []>} : vector<128x128xbf16>, vector<128x128xbf16>, vector<128x128xf32> -> vector<128x128xf32>
    %c0_21 = arith.constant 0 : index
    %c0_22 = arith.constant 0 : index
    %28 = vector.load %arg9[%c0_21, %c0_22] : memref<1x128xf32, #tpu.memory_space<vmem>>, vector<1x128xf32>
    %29 = vector.broadcast %28 : vector<1x128xf32> to vector<128x128xf32>
    %30 = arith.addf %27, %29 : vector<128x128xf32>
    %cst_23 = arith.constant dense<0xFF800000> : vector<128xf32>
    %31 = vector.multi_reduction <maximumf>, %30, %cst_23 [1] : vector<128x128xf32> to vector<128xf32>
    %32 = vector.shape_cast %31 : vector<128xf32> to vector<128x1xf32>
    %33 = vector.broadcast %32 : vector<128x1xf32> to vector<128x128xf32>
    %34 = arith.subf %30, %33 : vector<128x128xf32>
    %35 = math.exp %34 : vector<128x128xf32>
    %cst_24 = arith.constant dense<0.000000e+00> : vector<128xf32>
    %36 = vector.multi_reduction <add>, %35, %cst_24 [1] : vector<128x128xf32> to vector<128xf32>
    %37 = vector.shape_cast %36 : vector<128xf32> to vector<128x1xf32>
    %38 = math.log %37 : vector<128x1xf32>
    %39 = vector.broadcast %38 : vector<128x1xf32> to vector<128x128xf32>
    %40 = arith.subf %34, %39 : vector<128x128xf32>
    %c0_25 = arith.constant 0 : index
    %c0_26 = arith.constant 0 : index
    %41 = vector.load %arg10[%c0_25, %c0_26] : memref<128x128xf32, #tpu.memory_space<vmem>>, vector<128x128xf32>
    tpu.vector_store %arg10[%c0_25, %c0_26], %40 {strides = array<i32>} : memref<128x128xf32, #tpu.memory_space<vmem>>, vector<128x128xf32>,
    return
  }
  func.func @transform_0(%arg0: i32) -> (i32, i32) {
    %c0_i32 = arith.constant 0 : i32
    %c0_i32_0 = arith.constant 0 : i32
    return %arg0, %c0_i32 : i32, i32
  }
  func.func @transform_1(%arg0: i32) -> (i32, i32) {
    %c0_i32 = arith.constant 0 : i32
    %c0_i32_0 = arith.constant 0 : i32
    %c0_i32_1 = arith.constant 0 : i32
    return %c0_i32, %c0_i32_0 : i32, i32
  }
  func.func @transform_2(%arg0: i32) -> (i32, i32) {
    %c0_i32 = arith.constant 0 : i32
    %c0_i32_0 = arith.constant 0 : i32
    %c0_i32_1 = arith.constant 0 : i32
    return %c0_i32, %c0_i32_0 : i32, i32
  }
  func.func @transform_3(%arg0: i32) -> (i32, i32) {
    %c0_i32 = arith.constant 0 : i32
    %c0_i32_0 = arith.constant 0 : i32
    %c0_i32_1 = arith.constant 0 : i32
    return %c0_i32, %c0_i32_0 : i32, i32
  }
  func.func @transform_4(%arg0: i32) -> (i32, i32) {
    %c0_i32 = arith.constant 0 : i32
    %c0_i32_0 = arith.constant 0 : i32
    %c0_i32_1 = arith.constant 0 : i32
    return %c0_i32, %c0_i32_0 : i32, i32
  }
  func.func @transform_5(%arg0: i32) -> (i32, i32) {
    %c0_i32 = arith.constant 0 : i32
    %c0_i32_0 = arith.constant 0 : i32
    %c0_i32_1 = arith.constant 0 : i32
    return %c0_i32, %c0_i32_0 : i32, i32
  }
  func.func @transform_6(%arg0: i32) -> (i32, i32) {
    %c0_i32 = arith.constant 0 : i32
    %c0_i32_0 = arith.constant 0 : i32
    %c0_i32_1 = arith.constant 0 : i32
    return %c0_i32, %c0_i32_0 : i32, i32
  }
  func.func @transform_7(%arg0: i32) -> (i32, i32) {
    %c0_i32 = arith.constant 0 : i32
    %c0_i32_0 = arith.constant 0 : i32
    %c0_i32_1 = arith.constant 0 : i32
    return %c0_i32, %c0_i32_0 : i32, i32
  }
  func.func @transform_8(%arg0: i32) -> (i32, i32) {
    %c0_i32 = arith.constant 0 : i32
    %c0_i32_0 = arith.constant 0 : i32
    %c0_i32_1 = arith.constant 0 : i32
    return %c0_i32, %c0_i32_0 : i32, i32
  }
  func.func @transform_9(%arg0: i32) -> (i32, i32) {
    %c0_i32 = arith.constant 0 : i32
    %c0_i32_0 = arith.constant 0 : i32
    return %arg0, %c0_i32 : i32, i32
  }
}

</mosaic_0001>

<bundles_post_ra>
// kernel: ffn_mnist_forward.1
= control target key start
LH: loop header
LB: loop body
LE: loop exit
PB: predicated region body
PF: predicated region fallthrough
CT: control target
= control target key end

     0   :  { %s2791_s30 = smov 0   ;;  %s3350_s0 = inlined_call_operand.vmem [shape: f32[256,784], index: 0, kind: input, shape index: {}]   ;;  %s3351_s1 = inlined_call_operand.vmem [shape: bf16[784,128], index: 1, kind: input, shape index: {}]   ;;  %s3352_s2 = inlined_call_operand.vmem [shape: f32[1,128], index: 2, kind: input, shape index: {}]   ;;  %s3353_s3 = inlined_call_operand.vmem [shape: bf16[128,128], index: 3, kind: input, shape index: {}]   ;;  %s3354_s4 = inlined_call_operand.vmem [shape: f32[1,128], index: 4, kind: input, shape index: {}]   ;;  %s3355_s5 = inlined_call_operand.vmem [shape: bf16[128,128], index: 5, kind: input, shape index: {}]   ;;  %s3356_s6 = inlined_call_operand.vmem [shape: f32[1,128], index: 6, kind: input, shape index: {}]   ;;  %s3357_s7 = inlined_call_operand.vmem [shape: bf16[128,128], index: 7, kind: input, shape index: {}]   ;;  %s3358_s8 = inlined_call_operand.vmem [shape: f32[1,128], index: 8, kind: input, shape index: {}]   ;;  %s3359_s9 = inlined_call_operand.vmem [shape: f32[256,128], index: 9, kind: output, shape index: {}]  }
   0x1 LB: > { %s2128_s10 = sadd.s32 4294967295, %s2739_s30   ;;  %p2132_p0 = scmp.ge.s32.totalorder %s2739_s30, 1  ;;  %s2739_s30 = sphi %s2791_s30, %s19_s30  }
   0x2   : > { %p289_p1 = scmp.lt.s32.totalorder %s2739_s30, 3 }
   0x4   : > { %p290_p2 = pnand %p2132_p0, %p289_p1 }
   0x5   : > { %v2596_v0 = vld [vmem:[%s3351_s1 + $0x40] sm:$0xff] (!%p290_p2)   ;;  %v2600_v4 = vld [vmem:[%s3351_s1 + $0x48] sm:$0xff] (!%p290_p2)   ;;  %v2604_v8 = vld [vmem:[%s3351_s1 + $0x50] sm:$0xff] (!%p290_p2)   ;;  %s2133_s20 = sshll.u32 (!%p290_p2), %s2128_s10, 4  ;;  %vm907_vm0 = vcmask (!%p290_p2), 130048  }
   0x6   : > { %293 = sbr.rel (%p290_p2) target bundleno = 1363 (0x553), region = 56  ;;  %v2597_v1 = vld [vmem:[%s3351_s1] sm:$0xff] (!%p290_p2)   ;;  %2224 = vmatprep.subr.bf16.mxu0 (!%p290_p2), %v2596_v0  ;;  %v2601_v5 = vld [vmem:[%s3351_s1 + $0x8] sm:$0xff] (!%p290_p2)   ;;  %v2605_v9 = vld [vmem:[%s3351_s1 + $0x10] sm:$0xff] (!%p290_p2)   ;;  %p327_p3 = scmp.lt.s32.totalorder (!%p290_p2), %s2133_s20, 31 }
   0x7   : > { %v2598_v2 = vld [vmem:[%s3351_s1 + $0xc0] sm:$0xff] (!%p290_p2)   ;;  %2225 = vmatpush3.bf16.msra.mxu0 (!%p290_p2), %v2597_v1  ;;  %v2602_v6 = vld [vmem:[%s3351_s1 + $0xc8] sm:$0xff] (!%p290_p2)   ;;  %v2606_v10 = vld [vmem:[%s3351_s1 + $0xd0] sm:$0xff] (!%p290_p2)  }
   0x8   : > { %v2599_v3 = vld [vmem:[%s3351_s1 + $0x80] sm:$0xff] (!%p290_p2)   ;;  %2288 = vmatprep.subr.bf16.mxu1 (!%p290_p2), %v2598_v2  ;;  %2226 = vmatprep.subr.bf16.mxu0 (!%p290_p2), %v2600_v4  ;;  %v2603_v7 = vld [vmem:[%s3351_s1 + $0x88] sm:$0xff] (!%p290_p2)   ;;  %v2607_v11 = vld [vmem:[%s3351_s1 + $0x90] sm:$0xff] (!%p290_p2)  }
   0x9   : > { %2289 = vmatpush3.bf16.msra.mxu1 (!%p290_p2), %v2599_v3  ;;  %v2608_v12 = vld [vmem:[%s3351_s1 + $0x58] sm:$0xff] (!%p290_p2)   ;;  %v2612_v16 = vld [vmem:[%s3351_s1 + $0x60] sm:$0xff] (!%p290_p2)   ;;  %v2616_v20 = vld [vmem:[%s3351_s1 + $0x68] sm:$0xff] (!%p290_p2)  }
   0xa   : > { %2290 = vmatprep.subr.bf16.mxu1 (!%p290_p2), %v2602_v6  ;;  %v2609_v13 = vld [vmem:[%s3351_s1 + $0x18] sm:$0xff] (!%p290_p2)   ;;  %v2613_v17 = vld [vmem:[%s3351_s1 + $0x20] sm:$0xff] (!%p290_p2)   ;;  %v2617_v21 = vld [vmem:[%s3351_s1 + $0x28] sm:$0xff] (!%p290_p2)  }
   0xb   : > { %2227 = vmatpush3.bf16.msra.mxu0 (!%p290_p2), %v2601_v5  ;;  %v2610_v14 = vld [vmem:[%s3351_s1 + $0xd8] sm:$0xff] (!%p290_p2)   ;;  %v2614_v18 = vld [vmem:[%s3351_s1 + $0xe0] sm:$0xff] (!%p290_p2)   ;;  %v2618_v22 = vld [vmem:[%s3351_s1 + $0xe8] sm:$0xff] (!%p290_p2)  }
   0xc   : > { %2228 = vmatprep.subr.bf16.mxu0 (!%p290_p2), %v2604_v8  ;;  %v2611_v15 = vld [vmem:[%s3351_s1 + $0x98] sm:$0xff] (!%p290_p2)   ;;  %v2615_v19 = vld [vmem:[%s3351_s1 + $0xa0] sm:$0xff] (!%p290_p2)   ;;  %v2619_v23 = vld [vmem:[%s3351_s1 + $0xa8] sm:$0xff] (!%p290_p2)  }
   0xd   : > { %2291 = vmatpush3.bf16.msra.mxu1 %v2603_v7  ;;  %s3361_s20 = smov (!%p327_p3, %s2133_s20), 31  ;;  %v2620_v24 = vld [vmem:[%s3351_s1 + $0x70] sm:$0xff]   ;;  %v2624_v28 = vld [vmem:[%s3351_s1 + $0x78] sm:$0xff]   ;;  %v2628_v38 = vld [vmem:[%s3351_s1 + $0x140] sm:$0xff]  }
   0xe   : > { %2292 = vmatprep.subr.bf16.mxu1 %v2606_v10  ;;  %s2587_s24 = smul.u32 56, %s3361_s20  ;;  %v2621_v25 = vld [vmem:[%s3351_s1 + $0x30] sm:$0xff]   ;;  %v2625_v29 = vld [vmem:[%s3351_s1 + $0x38] sm:$0xff]   ;;  %v2629_v42 = vld [vmem:[%s3351_s1 + $0x100] sm:$0xff]   ;;  %s2136_s19 = sshll.u32 %s3361_s20, 3 }
   0xf   : > { %2229 = vmatpush3.bf16.msra.mxu0 %v2605_v9  ;;  %v2622_v26 = vld [vmem:[%s3351_s1 + $0xf0] sm:$0xff]   ;;  %v2626_v30 = vld [vmem:[%s3351_s1 + $0xf8] sm:$0xff]   ;;  %v2630_v51 = vld [vmem:[%s3351_s1 + $0x148] sm:$0xff]   ;;  %s3313_s23 = scalar_lea.vmem %s3359_s9, %s2136_s19 }
  0x10   : > { %2230 = vmatprep.subr.bf16.mxu0 %v2608_v12  ;;  %v2623_v27 = vld [vmem:[%s3351_s1 + $0xb0] sm:$0xff]   ;;  %s2894_s15 = scalar_lea.vmem %s3350_s0, %s2587_s24  ;;  %v2627_v34 = vld [vmem:[%s3351_s1 + $0xb8] sm:$0xff]   ;;  %v2631_v56 = vld [vmem:[%s3351_s1 + $0x108] sm:$0xff]  }
  0x11   : > { %2293 = vmatpush3.bf16.msra.mxu1 %v2607_v11  ;;  %v341_v31 = vld [vmem:[%s2894_s15 + $0x8] sm:$0xff]  ;;  %v348_v32 = vld [vmem:[%s2894_s15 + $0x40] sm:$0xff]  ;;  %v347_v36 = vld [vmem:[%s2894_s15 + $0x38] sm:$0xff] }
  0x12   : > { %2294 = vmatprep.subr.bf16.mxu1 %v2610_v14  ;;  %v453_v33 = vpack.c.bf16 %v348_v32, %v341_v31  ;;  %v340_v35 = vld [vmem:[%s2894_s15] sm:$0xff]  ;;  %v343_v39 = vld [vmem:[%s2894_s15 + $0x18] sm:$0xff]  ;;  %v350_v40 = vld [vmem:[%s2894_s15 + $0x50] sm:$0xff] }
  0x13   : > { %2231 = vmatpush3.bf16.msra.mxu0 %v2609_v13  ;;  %v452_v37 = vpack.c.bf16 %v347_v36, %v340_v35  ;;  %v455_v41 = vpack.c.bf16 %v350_v40, %v343_v39  ;;  %v342_v43 = vld [vmem:[%s2894_s15 + $0x10] sm:$0xff]  ;;  %v349_v44 = vld [vmem:[%s2894_s15 + $0x48] sm:$0xff]  ;;  %v355_v45 = vld [vmem:[%s2894_s15 + $0x78] sm:$0xff] }
  0x14   : > { %2232 = vmatprep.subr.bf16.mxu0 %v2612_v16  ;;  %964 = vmatprep.mubr.bf16.mxu0 %v453_v33  ;;  %v454_v46 = vpack.c.bf16 %v349_v44, %v342_v43  ;;  %v362_v47 = vld [vmem:[%s2894_s15 + $0xb0] sm:$0xff]  ;;  %v361_v49 = vld [vmem:[%s2894_s15 + $0xa8] sm:$0xff]  ;;  %v364_v53 = vld [vmem:[%s2894_s15 + $0xc0] sm:$0xff] }
  0x15   : > { %2295 = vmatpush3.bf16.msra.mxu1 %v2611_v15  ;;  %1061 = vmatprep.mubr.bf16.mxu1 %v455_v41  ;;  %v354_v48 = vld [vmem:[%s2894_s15 + $0x70] sm:$0xff]  ;;  %v460_v50 = vpack.c.bf16 %v362_v47, %v355_v45  ;;  %v357_v52 = vld [vmem:[%s2894_s15 + $0x88] sm:$0xff]  ;;  %v356_v57 = vld [vmem:[%s2894_s15 + $0x80] sm:$0xff] }
  0x16   : > { %2296 = vmatprep.subr.bf16.mxu1 %v2614_v18  ;;  %v459_v54 = vpack.c.bf16 %v361_v49, %v354_v48  ;;  %v462_v55 = vpack.c.bf16 %v364_v53, %v357_v52  ;;  %v363_v58 = vld [vmem:[%s2894_s15 + $0xb8] sm:$0xff]  ;;  %v369_v59 = vld [vmem:[%s2894_s15 + $0xe8] sm:$0xff]  ;;  %v376_v60 = vld [vmem:[%s2894_s15 + $0x120] sm:$0xff] }
  0x17   : > { %2233 = vmatpush3.bf16.msra.mxu0 %v2613_v17  ;;  %v467_v61 = vpack.c.bf16 %v376_v60, %v369_v59  ;;  %v461_v62 = vpack.c.bf16 %v363_v58, %v356_v57  ;;  %v2632_v63 = vld [vmem:[%s3351_s1 + $0x150] sm:$0xff]   ;;  %v371_v0 = vld [vmem:[%s2894_s15 + $0xf8] sm:$0xff]  ;;  %v368_v2 = vld [vmem:[%s2894_s15 + $0xe0] sm:$0xff] }
  0x18   : > { %2234 = vmatprep.subr.bf16.mxu0 %v2616_v20  ;;  %v378_v1 = vld [vmem:[%s2894_s15 + $0x130] sm:$0xff]  ;;  %v375_v3 = vld [vmem:[%s2894_s15 + $0x118] sm:$0xff]  ;;  %v377_v9 = vld [vmem:[%s2894_s15 + $0x128] sm:$0xff] }
  0x19   : > { %2297 = vmatpush3.bf16.msra.mxu1 %v2615_v19  ;;  %v469_v4 = vpack.c.bf16 %v378_v1, %v371_v0  ;;  %v2633_v5 = vld [vmem:[%s3351_s1 + $0x110] sm:$0xff]   ;;  %v383_v7 = vld [vmem:[%s2894_s15 + $0x158] sm:$0xff]  ;;  %v466_v10 = vpack.c.bf16 %v375_v3, %v368_v2  ;;  %v385_v12 = vld [vmem:[%s2894_s15 + $0x168] sm:$0xff] }
  0x1a   : > { %2298 = vmatprep.subr.bf16.mxu1 %v2618_v22  ;;  %v370_v6 = vld [vmem:[%s2894_s15 + $0xf0] sm:$0xff]  ;;  %v2634_v11 = vld [vmem:[%s3351_s1 + $0x158] sm:$0xff]   ;;  %v392_v13 = vld [vmem:[%s2894_s15 + $0x1a0] sm:$0xff] }
  0x1b   : > { %2235 = vmatpush3.bf16.msra.mxu0 %v2617_v21  ;;  %v390_v8 = vld [vmem:[%s2894_s15 + $0x190] sm:$0xff]  ;;  %v2635_v15 = vld [vmem:[%s3351_s1 + $0x118] sm:$0xff]   ;;  %v468_v16 = vpack.c.bf16 %v377_v9, %v370_v6  ;;  %v476_v18 = vpack.c.bf16 %v392_v13, %v385_v12  ;;  %v2636_v19 = vld [vmem:[%s3351_s1 + $0x160] sm:$0xff]  }
  0x1c   : > { %2236 = vmatprep.subr.bf16.mxu0 %v2620_v24  ;;  %v474_v14 = vpack.c.bf16 %v390_v8, %v383_v7  ;;  %v382_v17 = vld [vmem:[%s2894_s15 + $0x150] sm:$0xff]  ;;  %v389_v20 = vld [vmem:[%s2894_s15 + $0x188] sm:$0xff]  ;;  %v404_v22 = vld [vmem:[%s2894_s15 + $0x200] sm:$0xff] }
  0x1d   : > { %2299 = vmatpush3.bf16.msra.mxu1 %v2619_v23  ;;  %v397_v21 = vld [vmem:[%s2894_s15 + $0x1c8] sm:$0xff]  ;;  %v2637_v23 = vld [vmem:[%s3351_s1 + $0x120] sm:$0xff]   ;;  %v473_v24 = vpack.c.bf16 %v389_v20, %v382_v17  ;;  %v403_v36 = vld [vmem:[%s2894_s15 + $0x1f8] sm:$0xff] }
  0x1e   : > { %2300 = vmatprep.subr.bf16.mxu1 %v2622_v26  ;;  %v391_v26 = vld [vmem:[%s2894_s15 + $0x198] sm:$0xff]  ;;  %v2639_v31 = vld [vmem:[%s3351_s1 + $0x168] sm:$0xff]   ;;  %v396_v35 = vld [vmem:[%s2894_s15 + $0x1c0] sm:$0xff] }
  0x1f   : > { %2237 = vmatpush3.bf16.msra.mxu0 %v2621_v25  ;;  %v384_v25 = vld [vmem:[%s2894_s15 + $0x160] sm:$0xff]  ;;  %v398_v39 = vld [vmem:[%s2894_s15 + $0x1d0] sm:$0xff]  ;;  %v405_v40 = vld [vmem:[%s2894_s15 + $0x208] sm:$0xff] }
  0x20   : > { %2238 = vmatprep.subr.bf16.mxu0 %v2624_v28  ;;  %v481_v28 = vpack.c.bf16 %v404_v22, %v397_v21  ;;  %v475_v32 = vpack.c.bf16 %v391_v26, %v384_v25  ;;  %v2641_v41 = vld [vmem:[%s3351_s1 + $0x170] sm:$0xff]   ;;  %v413_v45 = vld [vmem:[%s2894_s15 + $0x248] sm:$0xff]  ;;  %v482_v47 = vpack.c.bf16 %v405_v40, %v398_v39  ;;  %v2643_v48 = vld [vmem:[%s3351_s1 + $0x178] sm:$0xff]  }
  0x21   : > { %2301 = vmatpush3.bf16.msra.mxu1 %v2623_v27  ;;  %v2638_v27 = vld [vmem:[%s3351_s1 + $0x180] sm:$0xff]   ;;  %v2642_v43 = vld [vmem:[%s3351_s1 + $0x130] sm:$0xff]   ;;  %v2644_v52 = vld [vmem:[%s3351_s1 + $0x138] sm:$0xff]  }
  0x22   : > { %2302 = vmatprep.subr.bf16.mxu1 %v2626_v30  ;;  %v406_v30 = vld [vmem:[%s2894_s15 + $0x210] sm:$0xff]  ;;  %v425_v53 = vld [vmem:[%s2894_s15 + $0x2a8] sm:$0xff]  ;;  %v419_v57 = vld [vmem:[%s2894_s15 + $0x278] sm:$0xff] }
  0x23   : > { %2239 = vmatpush3.bf16.msra.mxu0 %v2625_v29  ;;  %v399_v29 = vld [vmem:[%s2894_s15 + $0x1d8] sm:$0xff]  ;;  %v410_v49 = vld [vmem:[%s2894_s15 + $0x230] sm:$0xff]  ;;  %v441_v7 = vld [vmem:[%s2894_s15 + $0x328] sm:$0xff] }
  0x24   : > { %2352 = vmatprep.subr.bf16.mxu0 %v2628_v38  ;;  %v483_v33 = vpack.c.bf16 %v406_v30, %v399_v29  ;;  %v418_v38 = vld [vmem:[%s2894_s15 + $0x270] sm:$0xff]  ;;  %v427_v59 = vld [vmem:[%s2894_s15 + $0x2b8] sm:$0xff]  ;;  %v448_v8 = vld [vmem:[%s2894_s15 + $0x360] sm:$0xff] }
  0x25   : > { %2303 = vmatpush3.bf16.msra.mxu1 %v2627_v34  ;;  %v2640_v34 = vld [vmem:[%s3351_s1 + $0x128] sm:$0xff]   ;;  %v434_v60 = vld [vmem:[%s2894_s15 + $0x2f0] sm:$0xff]  ;;  %v431_v0 = vld [vmem:[%s2894_s15 + $0x2d8] sm:$0xff] }
  0x26   : > { %965 = vmatmul.mubr.bf16.vlgmr.msra.gmra.mrb[0].mxu0 %v452_v37  ;;  %2473 = vmatprep.subr.bf16.mxu1 %v2638_v27  ;;  %v411_v37 = vld [vmem:[%s2894_s15 + $0x238] sm:$0xff]  ;;  %v446_v2 = vld [vmem:[%s2894_s15 + $0x350] sm:$0xff]  ;;  %v445_v12 = vld [vmem:[%s2894_s15 + $0x348] sm:$0xff] }
  0x27   : > { %2353 = vmatpush3.bf16.msra.mxu0 %v2629_v42  ;;  %972 = vmatprep.mubr.bf16.mxu0 %v460_v50  ;;  %v480_v42 = vpack.c.bf16 %v403_v36, %v396_v35  ;;  %v488_v44 = vpack.c.bf16 %v418_v38, %v411_v37  ;;  %v439_v1 = vld [vmem:[%s2894_s15 + $0x318] sm:$0xff]  ;;  %v345_v13 = vld [vmem:[%s2894_s15 + $0x28] sm:$0xff]  ;;  %v346_v17 = vld [vmem:[%s2894_s15 + $0x30] sm:$0xff] }
  0x28   : > { %1062 = vmatmul.mubr.bf16.vlgmr.msra.gmra.mrb[0].mxu1 %v454_v46  ;;  %2354 = vmatprep.subr.bf16.mxu0 %v2630_v51  ;;  %v420_v46 = vld [vmem:[%s2894_s15 + $0x280] sm:$0xff]  ;;  %v417_v51 = vld [vmem:[%s2894_s15 + $0x268] sm:$0xff]  ;;  %v502_v6 = vpack.c.bf16 %v446_v2, %v439_v1  ;;  %v359_v25 = vld [vmem:[%s2894_s15 + $0x98] sm:$0xff] }
  0x29   : > { %1069 = vmatprep.mubr.bf16.mxu1 %v462_v55  ;;  %2474 = vmatpush3.bf16.msra.mxu1 %v2638_v27  ;;  %v490_v50 = vpack.c.bf16 %v420_v46, %v413_v45  ;;  %v487_v55 = vpack.c.bf16 %v417_v51, %v410_v49  ;;  %v344_v22 = vld [vmem:[%s2894_s15 + $0x20] sm:$0xff]  ;;  %v366_v26 = vld [vmem:[%s2894_s15 + $0xd0] sm:$0xff]  ;;  %v381_v30 = vld [vmem:[%s2894_s15 + $0x148] sm:$0xff] }
  0x2a   : > { %v360_v27 = vld [vmem:[%s2894_s15 + $0xa0] sm:$0xff]  ;;  %v374_v29 = vld [vmem:[%s2894_s15 + $0x110] sm:$0xff]  ;;  %v365_v35 = vld [vmem:[%s2894_s15 + $0xc8] sm:$0xff] }
  0x2b   : > { %2355 = vmatpush3.bf16.msra.mxu0 %v2631_v56  ;;  %v412_v56 = vld [vmem:[%s2894_s15 + $0x240] sm:$0xff]  ;;  %v472_v36 = vpack.c.bf16 %v381_v30, %v374_v29  ;;  %v373_v37 = vld [vmem:[%s2894_s15 + $0x108] sm:$0xff]  ;;  %v387_v49 = vld [vmem:[%s2894_s15 + $0x178] sm:$0xff] }
  0x2c   : > { %2356 = vmatprep.subr.bf16.mxu0 %v2632_v63  ;;  %v424_v63 = vld [vmem:[%s2894_s15 + $0x2a0] sm:$0xff]  ;;  %v451_v1 = vld [vmem:[%s2894_s15 + $0x378] sm:$0xff]  ;;  %v2650_v30 = vld [vmem:[%s3353_s3 + $0x28] sm:$0xff]  }
  0x2d   : > { %v494_v3 = vpack.c.bf16 %v431_v0, %v424_v63  ;;  %v380_v38 = vld [vmem:[%s2894_s15 + $0x140] sm:$0xff] }
  0x2e   : > { %973 = vmatmul.mubr.bf16.gmra.mrb[4].mxu0 %v459_v54  ;;  %v432_v54 = vld [vmem:[%s2894_s15 + $0x2e0] sm:$0xff] }
  0x2f   : > { %980 = vmatprep.mubr.bf16.mxu0 %v467_v61  ;;  %2357 = vmatpush3.bf16.msra.mxu0 %v2633_v5  ;;  %v495_v58 = vpack.c.bf16 %v432_v54, %v425_v53  ;;  %v489_v61 = vpack.c.bf16 %v419_v57, %v412_v56  ;;  %v433_v5 = vld [vmem:[%s2894_s15 + $0x2e8] sm:$0xff]  ;;  %v388_v40 = vld [vmem:[%s2894_s15 + $0x180] sm:$0xff]  ;;  %v423_v53 = vld [vmem:[%s2894_s15 + $0x298] sm:$0xff] }
  0x30   : > { %1070 = vmatmul.mubr.bf16.gmra.mrb[4].mxu1 %v461_v62  ;;  %2358 = vmatprep.subr.bf16.mxu0 %v2634_v11  ;;  %v497_v62 = vpack.c.bf16 %v434_v60, %v427_v59  ;;  %v438_v11 = vld [vmem:[%s2894_s15 + $0x310] sm:$0xff]  ;;  %v437_v56 = vld [vmem:[%s2894_s15 + $0x308] sm:$0xff]  ;;  %v444_v0 = vld [vmem:[%s2894_s15 + $0x340] sm:$0xff] }
  0x31   : > { %1077 = vmatprep.mubr.bf16.mxu1 %v469_v4  ;;  %v426_v4 = vld [vmem:[%s2894_s15 + $0x2b0] sm:$0xff]  ;;  %v393_v60 = vld [vmem:[%s2894_s15 + $0x1a8] sm:$0xff]  ;;  %v2649_v29 = vld [vmem:[%s3353_s3 + $0x20] sm:$0xff]  }
  0x32   : > { %v496_v9 = vpack.c.bf16 %v433_v5, %v426_v4  ;;  %v386_v59 = vld [vmem:[%s2894_s15 + $0x170] sm:$0xff]  ;;  %v400_v4 = vld [vmem:[%s2894_s15 + $0x1e0] sm:$0xff]  ;;  %v407_v5 = vld [vmem:[%s2894_s15 + $0x218] sm:$0xff] }
  0x33   : > { %2359 = vmatpush3.bf16.msra.mxu0 %v2635_v15  ;;  %v447_v15 = vld [vmem:[%s2894_s15 + $0x358] sm:$0xff]  ;;  %v477_v63 = vpack.c.bf16 %v393_v60, %v386_v59 }
  0x34   : > { %2360 = vmatprep.subr.bf16.mxu0 %v2636_v19  ;;  %v501_v19 = vpack.c.bf16 %v445_v12, %v438_v11  ;;  %v421_v11 = vld [vmem:[%s2894_s15 + $0x288] sm:$0xff] }
  0x35   : > { %v429_v12 = vld [vmem:[%s2894_s15 + $0x2c8] sm:$0xff] }
  0x36   : > { %981 = vmatmul.mubr.bf16.gmra.mrb[8].mxu0 %v466_v10  ;;  %v504_v10 = vpack.c.bf16 %v448_v8, %v441_v7  ;;  %v422_v7 = vld [vmem:[%s2894_s15 + $0x290] sm:$0xff]  ;;  %v484_v8 = vpack.c.bf16 %v407_v5, %v400_v4 }
  0x37   : > { %988 = vmatprep.mubr.bf16.mxu0 %v474_v14  ;;  %2361 = vmatpush3.bf16.msra.mxu0 %v2637_v23  ;;  %v440_v14 = vld [vmem:[%s2894_s15 + $0x320] sm:$0xff]  ;;  %v351_v23 = vld [vmem:[%s2894_s15 + $0x58] sm:$0xff] }
  0x38   : > { %1078 = vmatmul.mubr.bf16.gmra.mrb[8].mxu1 %v468_v16  ;;  %2362 = vmatprep.subr.bf16.mxu0 %v2639_v31  ;;  %v352_v16 = vld [vmem:[%s2894_s15 + $0x60] sm:$0xff]  ;;  %v503_v21 = vpack.c.bf16 %v447_v15, %v440_v14  ;;  %v456_v31 = vpack.c.bf16 %v351_v23, %v344_v22  ;;  %v442_v22 = vld [vmem:[%s2894_s15 + $0x330] sm:$0xff]  ;;  %v449_v23 = vld [vmem:[%s2894_s15 + $0x368] sm:$0xff] }
  0x39   : > { %1085 = vmatprep.mubr.bf16.mxu1 %v476_v18  ;;  %v353_v18 = vld [vmem:[%s2894_s15 + $0x68] sm:$0xff]  ;;  %v457_v20 = vpack.c.bf16 %v352_v16, %v345_v13  ;;  %v436_v13 = vld [vmem:[%s2894_s15 + $0x300] sm:$0xff] }
  0x3a   : > { %v499_v15 = vpack.c.bf16 %v436_v13, %v429_v12  ;;  %v428_v16 = vld [vmem:[%s2894_s15 + $0x2c0] sm:$0xff] }
  0x3b   : > { %2363 = vmatpush3.bf16.msra.mxu0 %v2640_v34  ;;  %v358_v34 = vld [vmem:[%s2894_s15 + $0x90] sm:$0xff] }
  0x3c   : > { %2364 = vmatprep.subr.bf16.mxu0 %v2641_v41  ;;  %v463_v39 = vpack.c.bf16 %v365_v35, %v358_v34  ;;  %v395_v41 = vld [vmem:[%s2894_s15 + $0x1b8] sm:$0xff]  ;;  %v3103_v34 = vld [vmem:[%s3352_s2] ss:$0 sm:$0xff] }
  0x3d   : > { %v479_v45 = vpack.c.bf16 %v395_v41, %v388_v40 }
  0x3e   : > { %989 = vmatmul.mubr.bf16.gmra.mrb[12].mxu0 %v473_v24  ;;  %v458_v24 = vpack.c.bf16 %v353_v18, %v346_v17  ;;  %v435_v17 = vld [vmem:[%s2894_s15 + $0x2f8] sm:$0xff] }
  0x3f   : > { %996 = vmatprep.mubr.bf16.mxu0 %v481_v28  ;;  %2365 = vmatpush3.bf16.msra.mxu0 %v2642_v43  ;;  %v367_v28 = vld [vmem:[%s2894_s15 + $0xd8] sm:$0xff]  ;;  %v402_v43 = vld [vmem:[%s2894_s15 + $0x1f0] sm:$0xff] }
  0x40   : > { %1086 = vmatmul.mubr.bf16.gmra.mrb[12].mxu1 %v475_v32  ;;  %2366 = vmatprep.subr.bf16.mxu0 %v2643_v48  ;;  %v464_v32 = vpack.c.bf16 %v366_v26, %v359_v25  ;;  %v379_v48 = vld [vmem:[%s2894_s15 + $0x138] sm:$0xff]  ;;  %v2645_v25 = vld [vmem:[%s3353_s3] sm:$0xff]   ;;  %v2646_v26 = vld [vmem:[%s3353_s3 + $0x8] sm:$0xff]  }
  0x41   : > { %1093 = vmatprep.mubr.bf16.mxu1 %v483_v33  ;;  %v465_v33 = vpack.c.bf16 %v367_v28, %v360_v27  ;;  %v443_v18 = vld [vmem:[%s2894_s15 + $0x338] sm:$0xff]  ;;  %2491 = vmatprep.subr.bf16.mxu1 %v2645_v25  ;;  %v2647_v27 = vld [vmem:[%s3353_s3 + $0x10] sm:$0xff]  }
  0x42   : > { %v2648_v28 = vld [vmem:[%s3353_s3 + $0x18] sm:$0xff]  }
  0x43   : > { %2367 = vmatpush3.bf16.msra.mxu0 %v2644_v52  ;;  %v416_v52 = vld [vmem:[%s2894_s15 + $0x260] sm:$0xff] }
  0x44   : > { %v493_v57 = vpack.c.bf16 %v423_v53, %v416_v52 }
  0x46   : > { %997 = vmatmul.mubr.bf16.gmra.mrb[16].mxu0 %v480_v42  ;;  %v471_v42 = vpack.c.bf16 %v380_v38, %v373_v37 }
  0x47   : > { %1004 = vmatprep.mubr.bf16.mxu0 %v488_v44  ;;  %v409_v44 = vld [vmem:[%s2894_s15 + $0x228] sm:$0xff] }
  0x48   : > { %1094 = vmatmul.mubr.bf16.gmra.mrb[16].mxu1 %v482_v47  ;;  %v486_v46 = vpack.c.bf16 %v409_v44, %v402_v43  ;;  %v372_v47 = vld [vmem:[%s2894_s15 + $0x100] sm:$0xff] }
  0x49   : > { %1101 = vmatprep.mubr.bf16.mxu1 %v490_v50  ;;  %v394_v50 = vld [vmem:[%s2894_s15 + $0x1b0] sm:$0xff]  ;;  %v470_v51 = vpack.c.bf16 %v379_v48, %v372_v47  ;;  %v2653_v47 = vld [vmem:[%s3355_s5] sm:$0xff]   ;;  %v2654_v48 = vld [vmem:[%s3355_s5 + $0x8] sm:$0xff]  }
  0x4a   : > { %v478_v54 = vpack.c.bf16 %v394_v50, %v387_v49  ;;  %2523 = vmatprep.subr.bf16.mxu0 %v2653_v47 }
  0x4e   : > { %1005 = vmatmul.mubr.bf16.gmra.mrb[20].mxu0 %v487_v55  ;;  %v430_v55 = vld [vmem:[%s2894_s15 + $0x2d0] sm:$0xff] }
  0x4f   : > { %1012 = vmatprep.mubr.bf16.mxu0 %v495_v58  ;;  %v500_v58 = vpack.c.bf16 %v437_v56, %v430_v55  ;;  %v2655_v56 = vld [vmem:[%s3355_s5 + $0x10] sm:$0xff]  }
  0x50   : > { %1102 = vmatmul.mubr.bf16.gmra.mrb[20].mxu1 %v489_v61  ;;  %v401_v61 = vld [vmem:[%s2894_s15 + $0x1e8] sm:$0xff] }
  0x51   : > { %1109 = vmatprep.mubr.bf16.mxu1 %v497_v62  ;;  %v408_v62 = vld [vmem:[%s2894_s15 + $0x220] sm:$0xff] }
  0x52   : > { %v485_v2 = vpack.c.bf16 %v408_v62, %v401_v61 }
  0x56   : > { %1013 = vmatmul.mubr.bf16.gmra.mrb[24].mxu0 %v494_v3  ;;  %v507_v3 = vpack.c.bf16 %v451_v1, %v444_v0 }
  0x57   : > { %1020 = vmatprep.mubr.bf16.mxu0 %v502_v6  ;;  %v415_v6 = vld [vmem:[%s2894_s15 + $0x258] sm:$0xff] }
  0x58   : > { %1110 = vmatmul.mubr.bf16.gmra.mrb[24].mxu1 %v496_v9  ;;  %v492_v9 = vpack.c.bf16 %v422_v7, %v415_v6 }
  0x59   : > { %1117 = vmatprep.mubr.bf16.mxu1 %v504_v10  ;;  %v414_v10 = vld [vmem:[%s2894_s15 + $0x250] sm:$0xff] }
  0x5a   : > { %v491_v14 = vpack.c.bf16 %v421_v11, %v414_v10  ;;  %v2657_v10 = vld [vmem:[%s3355_s5 + $0x20] sm:$0xff]  }
  0x5e   : > { %1021 = vmatmul.mubr.bf16.gmra.mrb[28].mxu0 %v501_v19  ;;  %v450_v19 = vld [vmem:[%s2894_s15 + $0x370] sm:$0xff] }
  0x5f   : > { %1158 = vmatprep.mubr.bf16.mxu0 %v457_v20  ;;  %v498_v20 = vpack.c.bf16 %v435_v17, %v428_v16 }
  0x60   : > { %1118 = vmatmul.mubr.bf16.gmra.mrb[28].mxu1 %v503_v21  ;;  %v506_v21 = vpack.c.bf16 %v450_v19, %v443_v18 }
  0x61   : > { %2475 = vmatprep.mubr.msk.bf16.mxu1 %vm907_vm0, %v458_v24  ;;  %v505_v24 = vpack.c.bf16 %v449_v23, %v442_v22 }
  0x66   : > { %1159 = vmatmul.mubr.bf16.vlgmr.msra.gmra.mrb[32].mxu0 %v456_v31  ;;  %v2651_v31 = vld [vmem:[%s3353_s3 + $0x30] sm:$0xff]  }
  0x67   : > { %1166 = vmatprep.mubr.bf16.mxu0 %v464_v32  ;;  %v2652_v32 = vld [vmem:[%s3353_s3 + $0x38] sm:$0xff]   ;;  %2524 = vmatpush3.bf16.msra.mxu0 %v2653_v47 }
  0x68   : > { %2476 = vmatmul.mubr.msk.bf16.vlgmr.msra.gmra.mrb[32].mxu1 %vm907_vm0, %v465_v33  ;;  %2525 = vmatprep.subr.bf16.mxu0 %v2654_v48 }
  0x69   : > { %2479 = vmatprep.mubr.msk.bf16.mxu1 %vm907_vm0, %v472_v36  ;;  %2492 = vmatpush3.bf16.msra.mxu1 %v2645_v25 }
  0x6a   : > { %2493 = vmatprep.subr.bf16.mxu1 %v2646_v26 }
  0x6b   : > { %2526 = vmatpush3.bf16.msra.mxu0 %v2654_v48 }
  0x6c   : > { %2527 = vmatprep.subr.bf16.mxu0 %v2655_v56 }
  0x6d   : > { %2494 = vmatpush3.bf16.msra.mxu1 %v2646_v26 }
  0x6e   : > { %1167 = vmatmul.mubr.bf16.gmra.mrb[36].mxu0 %v463_v39  ;;  %2495 = vmatprep.subr.bf16.mxu1 %v2647_v27 }
  0x6f   : > { %1174 = vmatprep.mubr.bf16.mxu0 %v471_v42  ;;  %2528 = vmatpush3.bf16.msra.mxu0 %v2655_v56 }
  0x70   : > { %2480 = vmatmul.mubr.msk.bf16.gmra.mrb[36].mxu1 %vm907_vm0, %v479_v45 }
  0x71   : > { %2483 = vmatprep.mubr.msk.bf16.mxu1 %vm907_vm0, %v486_v46  ;;  %2496 = vmatpush3.bf16.msra.mxu1 %v2647_v27 }
  0x72   : > { %2497 = vmatprep.subr.bf16.mxu1 %v2648_v28 }
  0x75   : > { %2498 = vmatpush3.bf16.msra.mxu1 %v2648_v28 }
  0x76   : > { %1175 = vmatmul.mubr.bf16.gmra.mrb[40].mxu0 %v470_v51  ;;  %2499 = vmatprep.subr.bf16.mxu1 %v2649_v29 }
  0x77   : > { %1182 = vmatprep.mubr.bf16.mxu0 %v478_v54 }
  0x78   : > { %2484 = vmatmul.mubr.msk.bf16.gmra.mrb[40].mxu1 %vm907_vm0, %v493_v57 }
  0x79   : > { %2487 = vmatprep.mubr.msk.bf16.mxu1 %vm907_vm0, %v500_v58  ;;  %2500 = vmatpush3.bf16.msra.mxu1 %v2649_v29 }
  0x7a   : > { %2501 = vmatprep.subr.bf16.mxu1 %v2650_v30 }
  0x7d   : > { %2502 = vmatpush3.bf16.msra.mxu1 %v2650_v30 }
  0x7e   : > { %1183 = vmatmul.mubr.bf16.gmra.mrb[44].mxu0 %v477_v63  ;;  %2503 = vmatprep.subr.bf16.mxu1 %v2651_v31 }
  0x7f   : > { %1190 = vmatprep.mubr.bf16.mxu0 %v485_v2  ;;  %v2656_v2 = vld [vmem:[%s3355_s5 + $0x18] sm:$0xff]  }
  0x80   : > { %2488 = vmatmul.mubr.msk.bf16.gmra.mrb[44].mxu1 %vm907_vm0, %v507_v3  ;;  %2529 = vmatprep.subr.bf16.mxu0 %v2656_v2 }
  0x81   : > { %2504 = vmatpush3.bf16.msra.mxu1 %v2651_v31  ;;  %2530 = vmatpush3.bf16.msra.mxu0 %v2656_v2 }
  0x82   : > { %2505 = vmatprep.subr.bf16.mxu1 %v2652_v32  ;;  %2531 = vmatprep.subr.bf16.mxu0 %v2657_v10 }
  0x85   : > { %2506 = vmatpush3.bf16.msra.mxu1 %v2652_v32  ;;  %2532 = vmatpush3.bf16.msra.mxu0 %v2657_v10 }
  0x86   : > { %1191 = vmatmul.mubr.bf16.gmra.mrb[48].mxu0 %v484_v8 }
  0x87   : > { %1198 = vmatprep.mubr.bf16.mxu0 %v492_v9 }
  0x8e   : > { %1199 = vmatmul.mubr.bf16.gmra.mrb[52].mxu0 %v491_v14 }
  0x8f   : > { %1206 = vmatprep.mubr.bf16.mxu0 %v499_v15 }
  0x96   : > { %1207 = vmatmul.mubr.bf16.gmra.mrb[56].mxu0 %v498_v20  ;;  %v2658_v20 = vld [vmem:[%s3355_s5 + $0x28] sm:$0xff]  }
  0x97   : > { %1214 = vmatprep.mubr.bf16.mxu0 %v506_v21  ;;  %2533 = vmatprep.subr.bf16.mxu0 %v2658_v20 }
  0x98   : > { %2534 = vmatpush3.bf16.msra.mxu0 %v2658_v20 }
  0x9e   : > { %1215 = vmatmul.mubr.bf16.gmra.mrb[60].mxu0 %v505_v24 }
  0xf9   : > { %v2240_v33 = vpop.f32.mrb[0].mxu0 }
  0xfa   : > { %v2241_v35 = vpop.f32.mrb[1].mxu0 }
  0xfb   : > { %v2242_v36 = vadd.f32 %v2241_v35, %v2240_v33  ;;  %v2243_v37 = vpop.f32.mrb[2].mxu0  ;;  %v2304_v38 = vpop.f32.mrb[0].mxu1 }
  0xfc   : > { %v2244_v39 = vpop.f32.mrb[3].mxu0  ;;  %v2305_v42 = vpop.f32.mrb[1].mxu1 }
  0xfd   : > { %v967_v40 = vadd.f32 %v2242_v36, %v3103_v34  ;;  %v2245_v41 = vadd.f32 %v2244_v39, %v2243_v37  ;;  %v2306_v43 = vadd.f32 %v2305_v42, %v2304_v38  ;;  %v2307_v44 = vpop.f32.mrb[2].mxu1 }
  0xfe   : > { %v2308_v46 = vpop.f32.mrb[3].mxu1 }
  0xff   : > { %v970_v45 = vadd.f32 %v2245_v41, %v3103_v34  ;;  %v3113_v49 = vadd.f32 %v2306_v43, %v967_v40  ;;  %v2309_v50 = vadd.f32 %v2308_v46, %v2307_v44 }
 0x101   : > { %v2246_v51 = vpop.f32.mrb[4].mxu0  ;;  %v3115_v52 = vadd.f32 %v2309_v50, %v970_v45 }
 0x102   : > { %v2247_v53 = vpop.f32.mrb[5].mxu0 }
 0x103   : > { %v2248_v54 = vadd.f32 %v2247_v53, %v2246_v51  ;;  %v2249_v55 = vpop.f32.mrb[6].mxu0  ;;  %v2310_v57 = vpop.f32.mrb[4].mxu1 }
 0x104   : > { %v2250_v58 = vpop.f32.mrb[7].mxu0  ;;  %v2311_v61 = vpop.f32.mrb[5].mxu1 }
 0x105   : > { %v975_v59 = vadd.f32 %v2248_v54, %v3103_v34  ;;  %v2251_v60 = vadd.f32 %v2250_v58, %v2249_v55  ;;  %v2312_v62 = vadd.f32 %v2311_v61, %v2310_v57  ;;  %v2313_v63 = vpop.f32.mrb[6].mxu1 }
 0x106   : > { %v2314_v1 = vpop.f32.mrb[7].mxu1 }
 0x107   : > { %v978_v0 = vadd.f32 %v2251_v60, %v3103_v34  ;;  %v3125_v3 = vadd.f32 %v2312_v62, %v975_v59  ;;  %v2315_v4 = vadd.f32 %v2314_v1, %v2313_v63 }
 0x109   : > { %v2252_v5 = vpop.f32.mrb[8].mxu0  ;;  %v3127_v6 = vadd.f32 %v2315_v4, %v978_v0 }
 0x10a   : > { %v2253_v7 = vpop.f32.mrb[9].mxu0 }
 0x10b   : > { %v2254_v8 = vadd.f32 %v2253_v7, %v2252_v5  ;;  %v2255_v9 = vpop.f32.mrb[10].mxu0  ;;  %v2316_v11 = vpop.f32.mrb[8].mxu1 }
 0x10c   : > { %v2256_v12 = vpop.f32.mrb[11].mxu0  ;;  %v2317_v15 = vpop.f32.mrb[9].mxu1 }
 0x10d   : > { %v983_v13 = vadd.f32 %v2254_v8, %v3103_v34  ;;  %v2257_v14 = vadd.f32 %v2256_v12, %v2255_v9  ;;  %v2318_v16 = vadd.f32 %v2317_v15, %v2316_v11  ;;  %v2319_v17 = vpop.f32.mrb[10].mxu1 }
 0x10e   : > { %v2320_v19 = vpop.f32.mrb[11].mxu1 }
 0x10f   : > { %v986_v18 = vadd.f32 %v2257_v14, %v3103_v34  ;;  %v3137_v21 = vadd.f32 %v2318_v16, %v983_v13  ;;  %v2321_v22 = vadd.f32 %v2320_v19, %v2319_v17 }
 0x111   : > { %v2258_v23 = vpop.f32.mrb[12].mxu0  ;;  %v3139_v24 = vadd.f32 %v2321_v22, %v986_v18 }
 0x112   : > { %v2259_v25 = vpop.f32.mrb[13].mxu0 }
 0x113   : > { %v2260_v26 = vadd.f32 %v2259_v25, %v2258_v23  ;;  %v2261_v27 = vpop.f32.mrb[14].mxu0  ;;  %v2322_v28 = vpop.f32.mrb[12].mxu1 }
 0x114   : > { %v2262_v29 = vpop.f32.mrb[15].mxu0  ;;  %v2323_v32 = vpop.f32.mrb[13].mxu1 }
 0x115   : > { %v991_v30 = vadd.f32 %v2260_v26, %v3103_v34  ;;  %v2263_v31 = vadd.f32 %v2262_v29, %v2261_v27  ;;  %v2324_v33 = vadd.f32 %v2323_v32, %v2322_v28  ;;  %v2325_v35 = vpop.f32.mrb[14].mxu1 }
 0x116   : > { %v2326_v37 = vpop.f32.mrb[15].mxu1 }
 0x117   : > { %v994_v36 = vadd.f32 %v2263_v31, %v3103_v34  ;;  %v3143_v38 = vadd.f32 %v2324_v33, %v991_v30  ;;  %v2327_v39 = vadd.f32 %v2326_v37, %v2325_v35 }
 0x119   : > { %v2264_v40 = vpop.f32.mrb[16].mxu0  ;;  %v3145_v41 = vadd.f32 %v2327_v39, %v994_v36 }
 0x11a   : > { %v2265_v42 = vpop.f32.mrb[17].mxu0 }
 0x11b   : > { %v2266_v43 = vadd.f32 %v2265_v42, %v2264_v40  ;;  %v2267_v44 = vpop.f32.mrb[18].mxu0  ;;  %v2328_v45 = vpop.f32.mrb[16].mxu1 }
 0x11c   : > { %v2268_v46 = vpop.f32.mrb[19].mxu0  ;;  %v2329_v50 = vpop.f32.mrb[17].mxu1 }
 0x11d   : > { %v999_v47 = vadd.f32 %v2266_v43, %v3103_v34  ;;  %v2269_v48 = vadd.f32 %v2268_v46, %v2267_v44  ;;  %v2330_v51 = vadd.f32 %v2329_v50, %v2328_v45  ;;  %v2331_v53 = vpop.f32.mrb[18].mxu1 }
 0x11e   : > { %v2332_v55 = vpop.f32.mrb[19].mxu1 }
 0x11f   : > { %v1002_v54 = vadd.f32 %v2269_v48, %v3103_v34  ;;  %v3149_v56 = vadd.f32 %v2330_v51, %v999_v47  ;;  %v2333_v57 = vadd.f32 %v2332_v55, %v2331_v53 }
 0x121   : > { %v2270_v58 = vpop.f32.mrb[20].mxu0  ;;  %v3151_v59 = vadd.f32 %v2333_v57, %v1002_v54 }
 0x122   : > { %v2271_v60 = vpop.f32.mrb[21].mxu0 }
 0x123   : > { %v2272_v61 = vadd.f32 %v2271_v60, %v2270_v58  ;;  %v2273_v62 = vpop.f32.mrb[22].mxu0  ;;  %v2334_v63 = vpop.f32.mrb[20].mxu1 }
 0x124   : > { %v2274_v0 = vpop.f32.mrb[23].mxu0  ;;  %v2335_v4 = vpop.f32.mrb[21].mxu1 }
 0x125   : > { %v1007_v1 = vadd.f32 %v2272_v61, %v3103_v34  ;;  %v2275_v2 = vadd.f32 %v2274_v0, %v2273_v62  ;;  %v2336_v5 = vadd.f32 %v2335_v4, %v2334_v63  ;;  %v2337_v7 = vpop.f32.mrb[22].mxu1 }
 0x126   : > { %v2338_v9 = vpop.f32.mrb[23].mxu1 }
 0x127   : > { %v1010_v8 = vadd.f32 %v2275_v2, %v3103_v34  ;;  %v3155_v10 = vadd.f32 %v2336_v5, %v1007_v1  ;;  %v2339_v11 = vadd.f32 %v2338_v9, %v2337_v7 }
 0x129   : > { %v2276_v12 = vpop.f32.mrb[24].mxu0  ;;  %v3157_v13 = vadd.f32 %v2339_v11, %v1010_v8 }
 0x12a   : > { %v2277_v14 = vpop.f32.mrb[25].mxu0 }
 0x12b   : > { %v2278_v15 = vadd.f32 %v2277_v14, %v2276_v12  ;;  %v2279_v16 = vpop.f32.mrb[26].mxu0  ;;  %v2340_v17 = vpop.f32.mrb[24].mxu1 }
 0x12c   : > { %v2280_v18 = vpop.f32.mrb[27].mxu0  ;;  %v2341_v22 = vpop.f32.mrb[25].mxu1 }
 0x12d   : > { %v1015_v19 = vadd.f32 %v2278_v15, %v3103_v34  ;;  %v2281_v20 = vadd.f32 %v2280_v18, %v2279_v16  ;;  %v2342_v23 = vadd.f32 %v2341_v22, %v2340_v17  ;;  %v2343_v25 = vpop.f32.mrb[26].mxu1 }
 0x12e   : > { %v2344_v27 = vpop.f32.mrb[27].mxu1 }
 0x12f   : > { %v1018_v26 = vadd.f32 %v2281_v20, %v3103_v34  ;;  %v3161_v28 = vadd.f32 %v2342_v23, %v1015_v19  ;;  %v2345_v29 = vadd.f32 %v2344_v27, %v2343_v25 }
 0x131   : > { %v2282_v30 = vpop.f32.mrb[28].mxu0  ;;  %v3163_v31 = vadd.f32 %v2345_v29, %v1018_v26 }
 0x132   : > { %v2283_v32 = vpop.f32.mrb[29].mxu0 }
 0x133   : > { %v2284_v33 = vadd.f32 %v2283_v32, %v2282_v30  ;;  %v2285_v35 = vpop.f32.mrb[30].mxu0  ;;  %v2346_v36 = vpop.f32.mrb[28].mxu1 }
 0x134   : > { %v2286_v37 = vpop.f32.mrb[31].mxu0  ;;  %v2347_v42 = vpop.f32.mrb[29].mxu1 }
 0x135   : > { %v1023_v39 = vadd.f32 %v2284_v33, %v3103_v34  ;;  %v2287_v40 = vadd.f32 %v2286_v37, %v2285_v35  ;;  %v2348_v43 = vadd.f32 %v2347_v42, %v2346_v36  ;;  %v2349_v44 = vpop.f32.mrb[30].mxu1 }
 0x136   : > { %v2350_v46 = vpop.f32.mrb[31].mxu1 }
 0x137   : > { %v1026_v45 = vadd.f32 %v2287_v40, %v3103_v34  ;;  %v3167_v47 = vadd.f32 %v2348_v43, %v1023_v39  ;;  %v2351_v48 = vadd.f32 %v2350_v46, %v2349_v44 }
 0x139   : > { %v2368_v50 = vpop.f32.mrb[32].mxu0  ;;  %v3169_v51 = vadd.f32 %v2351_v48, %v1026_v45 }
 0x13a   : > { %v2369_v53 = vpop.f32.mrb[33].mxu0 }
 0x13b   : > { %v2370_v54 = vadd.f32 %v2369_v53, %v2368_v50  ;;  %v2371_v55 = vpop.f32.mrb[34].mxu0  ;;  %v2477_v58 = vpop.f32.mrb[32].mxu1 }
 0x13c   : > { %v2372_v57 = vpop.f32.mrb[35].mxu0  ;;  %v1257_v62 = vpop.f32.mrb[33].mxu1 }
 0x13d   : > { %v2373_v60 = vadd.f32 %v2372_v57, %v2371_v55  ;;  %v1161_v61 = vadd.f32 %v2370_v54, %v3113_v49  ;;  %v2478_v63 = vpop.f32.mrb[34].mxu1 }
 0x13e   : > { %v1260_v1 = vpop.f32.mrb[35].mxu1 }
 0x13f   : > { %v1258_v0 = vadd.f32 %v1257_v62, %v1161_v61  ;;  %v1164_v34 = vadd.f32 %v2373_v60, %v3115_v52 }
 0x141   : > { %v1261_v2 = vadd.f32 %v1260_v1, %v1164_v34  ;;  %v2374_v4 = vpop.f32.mrb[36].mxu0  ;;  %v1320_v7 = vmax.f32 %v1258_v0, 0.0 }
 0x142   : > { %v2375_v5 = vpop.f32.mrb[37].mxu0 }
 0x143   : > { %v1321_v8 = vmax.f32 %v1261_v2, 0.0  ;;  %v2376_v9 = vadd.f32 %v2375_v5, %v2374_v4  ;;  %v2377_v11 = vpop.f32.mrb[38].mxu0  ;;  %v2481_v14 = vpop.f32.mrb[36].mxu1 }
 0x144   : > { %v2378_v12 = vpop.f32.mrb[39].mxu0  ;;  %v1273_v49 = vpop.f32.mrb[37].mxu1 }
 0x145   : > { %v1336_v15 = vpack.c.bf16 %v1321_v8, %v1320_v7  ;;  %v1169_v16 = vadd.f32 %v2376_v9, %v3125_v3  ;;  %v2379_v17 = vadd.f32 %v2378_v12, %v2377_v11  ;;  %v2482_v18 = vpop.f32.mrb[38].mxu1 }
 0x146   : > { %v1276_v52 = vpop.f32.mrb[39].mxu1 }
 0x147   : > { %v1266_v19 = vadd.f32 %v2477_v58, %v1169_v16  ;;  %v1172_v20 = vadd.f32 %v2379_v17, %v3127_v6  ;;  %2507 = vmatprep.mubr.bf16.mxu1 %v1336_v15 }
 0x149   : > { %v1269_v22 = vadd.f32 %v2478_v63, %v1172_v20  ;;  %v2380_v23 = vpop.f32.mrb[40].mxu0  ;;  %v1322_v26 = vmax.f32 %v1266_v19, 0.0 }
 0x14a   : > { %v2381_v25 = vpop.f32.mrb[41].mxu0 }
 0x14b   : > { %v1323_v27 = vmax.f32 %v1269_v22, 0.0  ;;  %v2382_v29 = vadd.f32 %v2381_v25, %v2380_v23  ;;  %v2383_v30 = vpop.f32.mrb[42].mxu0  ;;  %v2485_v33 = vpop.f32.mrb[40].mxu1 }
 0x14c   : > { %v2384_v32 = vpop.f32.mrb[43].mxu0  ;;  %v1289_v37 = vpop.f32.mrb[41].mxu1 }
 0x14d   : > { %v1337_v35 = vpack.c.bf16 %v1323_v27, %v1322_v26  ;;  %v2385_v36 = vadd.f32 %v2384_v32, %v2383_v30  ;;  %v1177_v3 = vadd.f32 %v2382_v29, %v3137_v21  ;;  %v2486_v39 = vpop.f32.mrb[42].mxu1 }
 0x14e   : > { %v1292_v42 = vpop.f32.mrb[43].mxu1 }
 0x14f   : > { %v1274_v40 = vadd.f32 %v1273_v49, %v1177_v3  ;;  %2508 = vmatmul.mubr.bf16.vlgmr.msra.gmra.mrb[48].mxu1 %v1337_v35  ;;  %v1180_v6 = vadd.f32 %v2385_v36, %v3139_v24 }
 0x151   : > { %v1277_v43 = vadd.f32 %v1276_v52, %v1180_v6  ;;  %v2386_v44 = vpop.f32.mrb[44].mxu0  ;;  %v1324_v46 = vmax.f32 %v1274_v40, 0.0 }
 0x152   : > { %v2387_v45 = vpop.f32.mrb[45].mxu0 }
 0x153   : > { %v1325_v48 = vmax.f32 %v1277_v43, 0.0  ;;  %v2388_v50 = vadd.f32 %v2387_v45, %v2386_v44  ;;  %v2389_v53 = vpop.f32.mrb[46].mxu0  ;;  %v3177_v55 = vpop.f32.mrb[44].mxu1 }
 0x154   : > { %v2390_v54 = vpop.f32.mrb[47].mxu0  ;;  %v1305_v60 = vpop.f32.mrb[45].mxu1 }
 0x155   : > { %v1338_v57 = vpack.c.bf16 %v1325_v48, %v1324_v46  ;;  %v1185_v21 = vadd.f32 %v2388_v50, %v3143_v38  ;;  %v2391_v58 = vadd.f32 %v2390_v54, %v2389_v53  ;;  %v2490_v61 = vpop.f32.mrb[46].mxu1 }
 0x156   : > { %v1308_v63 = vpop.f32.mrb[47].mxu1 }
 0x157   : > { %v1282_v62 = vadd.f32 %v2481_v14, %v1185_v21  ;;  %v1188_v24 = vadd.f32 %v2391_v58, %v3145_v41  ;;  %2511 = vmatprep.mubr.bf16.mxu1 %v1338_v57 }
 0x159   : > { %v1285_v0 = vadd.f32 %v2482_v18, %v1188_v24  ;;  %v2392_v34 = vpop.f32.mrb[48].mxu0  ;;  %v1326_v2 = vmax.f32 %v1282_v62, 0.0  ;;  %v2664_v62 = vld [vmem:[%s3357_s7 + $0x18] sm:$0xff]   ;;  %v2665_v24 = vld [vmem:[%s3357_s7 + $0x20] sm:$0xff]  }
 0x15a   : > { %v2393_v1 = vpop.f32.mrb[49].mxu0 }
 0x15b   : > { %v1327_v4 = vmax.f32 %v1285_v0, 0.0  ;;  %v2394_v5 = vadd.f32 %v2393_v1, %v2392_v34  ;;  %v2395_v7 = vpop.f32.mrb[50].mxu0  ;;  %v2195_v0 = vld [vmem:[%s3354_s4] ss:$0 sm:$0xff] }
 0x15c   : > { %v2396_v8 = vpop.f32.mrb[51].mxu0 }
 0x15d   : > { %v2397_v9 = vadd.f32 %v2396_v8, %v2395_v7  ;;  %v1193_v11 = vadd.f32 %v2394_v5, %v3149_v56  ;;  %v1339_v38 = vpack.c.bf16 %v1327_v4, %v1326_v2 }
 0x15f   : > { %v1290_v12 = vadd.f32 %v1289_v37, %v1193_v11  ;;  %2512 = vmatmul.mubr.bf16.gmra.mrb[52].mxu1 %v1339_v38  ;;  %v1196_v14 = vadd.f32 %v2397_v9, %v3151_v59 }
 0x161   : > { %v1293_v15 = vadd.f32 %v1292_v42, %v1196_v14  ;;  %v2398_v41 = vpop.f32.mrb[52].mxu0  ;;  %v1328_v17 = vmax.f32 %v1290_v12, 0.0 }
 0x162   : > { %v2399_v16 = vpop.f32.mrb[53].mxu0 }
 0x163   : > { %v1329_v49 = vmax.f32 %v1293_v15, 0.0  ;;  %v2400_v18 = vadd.f32 %v2399_v16, %v2398_v41  ;;  %v2401_v19 = vpop.f32.mrb[54].mxu0 }
 0x164   : > { %v2402_v20 = vpop.f32.mrb[55].mxu0 }
 0x165   : > { %v1340_v52 = vpack.c.bf16 %v1329_v49, %v1328_v17  ;;  %v1201_v22 = vadd.f32 %v2400_v18, %v3155_v10  ;;  %v2403_v23 = vadd.f32 %v2402_v20, %v2401_v19 }
 0x167   : > { %v1298_v25 = vadd.f32 %v2485_v33, %v1201_v22  ;;  %v1204_v56 = vadd.f32 %v2403_v23, %v3157_v13  ;;  %2515 = vmatprep.mubr.bf16.mxu1 %v1340_v52 }
 0x169   : > { %v1301_v26 = vadd.f32 %v2486_v39, %v1204_v56  ;;  %v2404_v27 = vpop.f32.mrb[56].mxu0  ;;  %v1330_v59 = vmax.f32 %v1298_v25, 0.0 }
 0x16a   : > { %v2405_v29 = vpop.f32.mrb[57].mxu0 }
 0x16b   : > { %v1331_v30 = vmax.f32 %v1301_v26, 0.0  ;;  %v2406_v32 = vadd.f32 %v2405_v29, %v2404_v27  ;;  %v2407_v35 = vpop.f32.mrb[58].mxu0 }
 0x16c   : > { %v2408_v36 = vpop.f32.mrb[59].mxu0 }
 0x16d   : > { %v2409_v3 = vadd.f32 %v2408_v36, %v2407_v35  ;;  %v1209_v37 = vadd.f32 %v2406_v32, %v3161_v28  ;;  %v1341_v40 = vpack.c.bf16 %v1331_v30, %v1330_v59 }
 0x16f   : > { %v1306_v6 = vadd.f32 %v1305_v60, %v1209_v37  ;;  %2516 = vmatmul.mubr.bf16.gmra.mrb[56].mxu1 %v1341_v40  ;;  %v1212_v10 = vadd.f32 %v2409_v3, %v3163_v31  ;;  %v2659_v60 = vld [vmem:[%s3355_s5 + $0x30] sm:$0xff]  }
 0x170   : > { %2535 = vmatprep.subr.bf16.mxu0 %v2659_v60 }
 0x171   : > { %v1309_v33 = vadd.f32 %v1308_v63, %v1212_v10  ;;  %v2410_v42 = vpop.f32.mrb[60].mxu0  ;;  %v1332_v43 = vmax.f32 %v1306_v6, 0.0  ;;  %2536 = vmatpush3.bf16.msra.mxu0 %v2659_v60  ;;  %v2666_v63 = vld [vmem:[%s3357_s7 + $0x28] sm:$0xff]  }
 0x172   : > { %v2411_v13 = vpop.f32.mrb[61].mxu0 }
 0x173   : > { %v1333_v39 = vmax.f32 %v1309_v33, 0.0  ;;  %v2412_v44 = vadd.f32 %v2411_v13, %v2410_v42  ;;  %v2413_v45 = vpop.f32.mrb[62].mxu0 }
 0x174   : > { %v2414_v46 = vpop.f32.mrb[63].mxu0 }
 0x175   : > { %v1342_v48 = vpack.c.bf16 %v1333_v39, %v1332_v43  ;;  %v1217_v50 = vadd.f32 %v2412_v44, %v3167_v47  ;;  %v2415_v53 = vadd.f32 %v2414_v46, %v2413_v45  ;;  %v2660_v47 = vld [vmem:[%s3355_s5 + $0x38] sm:$0xff]  }
 0x176   : > { %2537 = vmatprep.subr.bf16.mxu0 %v2660_v47 }
 0x177   : > { %v1314_v54 = vadd.f32 %v3177_v55, %v1217_v50  ;;  %v1220_v28 = vadd.f32 %v2415_v53, %v3169_v51  ;;  %2519 = vmatprep.mubr.bf16.mxu1 %v1342_v48  ;;  %2538 = vmatpush3.bf16.msra.mxu0 %v2660_v47  ;;  %v2661_v51 = vld [vmem:[%s3357_s7] sm:$0xff]   ;;  %v2662_v55 = vld [vmem:[%s3357_s7 + $0x8] sm:$0xff]   ;;  %v2667_v47 = vld [vmem:[%s3357_s7 + $0x30] sm:$0xff]  }
 0x178   : > { %2555 = vmatprep.subr.bf16.mxu1 %v2661_v51 }
 0x179   : > { %v1317_v57 = vadd.f32 %v2490_v61, %v1220_v28  ;;  %v1334_v21 = vmax.f32 %v1314_v54, 0.0  ;;  %2556 = vmatpush3.bf16.msra.mxu1 %v2661_v51  ;;  %v2663_v61 = vld [vmem:[%s3357_s7 + $0x10] sm:$0xff]   ;;  %v2668_v51 = vld [vmem:[%s3357_s7 + $0x38] sm:$0xff]  }
 0x17a   : > { %2557 = vmatprep.subr.bf16.mxu1 %v2662_v55 }
 0x17b   : > { %v1335_v31 = vmax.f32 %v1317_v57, 0.0 }
 0x17d   : > { %v1343_v58 = vpack.c.bf16 %v1335_v31, %v1334_v21  ;;  %2558 = vmatpush3.bf16.msra.mxu1 %v2662_v55  ;;  %v2204_v55 = vld [vmem:[%s3356_s6] ss:$0 sm:$0xff] }
 0x17e   : > { %2559 = vmatprep.subr.bf16.mxu1 %v2663_v61 }
 0x17f   : > { %2520 = vmatmul.mubr.bf16.gmra.mrb[60].mxu1 %v1343_v58 }
 0x181   : > { %2560 = vmatpush3.bf16.msra.mxu1 %v2663_v61 }
 0x182   : > { %2561 = vmatprep.subr.bf16.mxu1 %v2664_v62 }
 0x185   : > { %2562 = vmatpush3.bf16.msra.mxu1 %v2664_v62 }
 0x186   : > { %2563 = vmatprep.subr.bf16.mxu1 %v2665_v24 }
 0x189   : > { %2564 = vmatpush3.bf16.msra.mxu1 %v2665_v24 }
 0x18a   : > { %2565 = vmatprep.subr.bf16.mxu1 %v2666_v63 }
 0x18d   : > { %2566 = vmatpush3.bf16.msra.mxu1 %v2666_v63 }
 0x18e   : > { %2567 = vmatprep.subr.bf16.mxu1 %v2667_v47 }
 0x191   : > { %2568 = vmatpush3.bf16.msra.mxu1 %v2667_v47 }
 0x192   : > { %2569 = vmatprep.subr.bf16.mxu1 %v2668_v51 }
 0x195   : > { %2570 = vmatpush3.bf16.msra.mxu1 %v2668_v51 }
 0x222   : > { %v2509_v34 = vpop.f32.mrb[48].mxu1 }
 0x223   : > { %v1458_v1 = vadd.f32 %v2509_v34, %v2195_v0  ;;  %v1449_v2 = vpop.f32.mrb[49].mxu1 }
 0x224   : > { %v1450_v4 = vadd.f32 %v2195_v0, %v1449_v2  ;;  %v2510_v5 = vpop.f32.mrb[50].mxu1 }
 0x225   : > { %v1461_v7 = vadd.f32 %v2510_v5, %v2195_v0  ;;  %v1452_v8 = vpop.f32.mrb[51].mxu1  ;;  %v1514_v11 = vmax.f32 %v1458_v1, 0.0 }
 0x226   : > { %v1453_v9 = vadd.f32 %v2195_v0, %v1452_v8  ;;  %v1512_v12 = vmax.f32 %v1450_v4, 0.0 }
 0x227   : > { %v1515_v38 = vmax.f32 %v1461_v7, 0.0 }
 0x228   : > { %v1513_v14 = vmax.f32 %v1453_v9, 0.0 }
 0x229   : > { %v1529_v15 = vpack.c.bf16 %v1515_v38, %v1514_v11 }
 0x22a   : > { %v1528_v41 = vpack.c.bf16 %v1513_v14, %v1512_v12 }
 0x22c   : > { %2539 = vmatprep.mubr.bf16.mxu0 %v1528_v41 }
 0x22d   : > { %2540 = vmatmul.mubr.bf16.vlgmr.msra.gmra.mrb[64].mxu0 %v1529_v15 }
 0x232   : > { %v2513_v16 = vpop.f32.mrb[52].mxu1 }
 0x233   : > { %v1474_v17 = vadd.f32 %v2513_v16, %v2195_v0  ;;  %v1465_v49 = vpop.f32.mrb[53].mxu1 }
 0x234   : > { %v1466_v18 = vadd.f32 %v2195_v0, %v1465_v49  ;;  %v2514_v19 = vpop.f32.mrb[54].mxu1 }
 0x235   : > { %v1477_v20 = vadd.f32 %v2514_v19, %v2195_v0  ;;  %v1468_v52 = vpop.f32.mrb[55].mxu1  ;;  %v1518_v23 = vmax.f32 %v1474_v17, 0.0 }
 0x236   : > { %v1469_v22 = vadd.f32 %v2195_v0, %v1468_v52  ;;  %v1516_v56 = vmax.f32 %v1466_v18, 0.0 }
 0x237   : > { %v1519_v25 = vmax.f32 %v1477_v20, 0.0 }
 0x238   : > { %v1517_v26 = vmax.f32 %v1469_v22, 0.0 }
 0x239   : > { %v1531_v27 = vpack.c.bf16 %v1519_v25, %v1518_v23 }
 0x23a   : > { %v1530_v29 = vpack.c.bf16 %v1517_v26, %v1516_v56 }
 0x23c   : > { %2543 = vmatprep.mubr.bf16.mxu0 %v1530_v29 }
 0x23d   : > { %2544 = vmatmul.mubr.bf16.gmra.mrb[68].mxu0 %v1531_v27 }
 0x242   : > { %v2517_v59 = vpop.f32.mrb[56].mxu1 }
 0x243   : > { %v1490_v30 = vadd.f32 %v2517_v59, %v2195_v0  ;;  %v1481_v32 = vpop.f32.mrb[57].mxu1 }
 0x244   : > { %v1482_v35 = vadd.f32 %v2195_v0, %v1481_v32  ;;  %v2518_v36 = vpop.f32.mrb[58].mxu1 }
 0x245   : > { %v1493_v3 = vadd.f32 %v2518_v36, %v2195_v0  ;;  %v1484_v37 = vpop.f32.mrb[59].mxu1  ;;  %v1522_v6 = vmax.f32 %v1490_v30, 0.0 }
 0x246   : > { %v1485_v40 = vadd.f32 %v2195_v0, %v1484_v37  ;;  %v1520_v33 = vmax.f32 %v1482_v35, 0.0 }
 0x247   : > { %v1523_v10 = vmax.f32 %v1493_v3, 0.0 }
 0x248   : > { %v1521_v42 = vmax.f32 %v1485_v40, 0.0 }
 0x249   : > { %v1533_v13 = vpack.c.bf16 %v1523_v10, %v1522_v6 }
 0x24a   : > { %v1532_v43 = vpack.c.bf16 %v1521_v42, %v1520_v33 }
 0x24c   : > { %2547 = vmatprep.mubr.bf16.mxu0 %v1532_v43 }
 0x24d   : > { %2548 = vmatmul.mubr.bf16.gmra.mrb[72].mxu0 %v1533_v13 }
 0x252   : > { %v2521_v39 = vpop.f32.mrb[60].mxu1 }
 0x253   : > { %v1506_v44 = vadd.f32 %v2521_v39, %v2195_v0  ;;  %v1497_v45 = vpop.f32.mrb[61].mxu1 }
 0x254   : > { %v1498_v46 = vadd.f32 %v2195_v0, %v1497_v45  ;;  %v2522_v48 = vpop.f32.mrb[62].mxu1 }
 0x255   : > { %v1509_v50 = vadd.f32 %v2522_v48, %v2195_v0  ;;  %v1500_v53 = vpop.f32.mrb[63].mxu1  ;;  %v1526_v28 = vmax.f32 %v1506_v44, 0.0 }
 0x256   : > { %v1501_v54 = vadd.f32 %v2195_v0, %v1500_v53  ;;  %v1524_v21 = vmax.f32 %v1498_v46, 0.0 }
 0x257   : > { %v1527_v57 = vmax.f32 %v1509_v50, 0.0 }
 0x258   : > { %v1525_v31 = vmax.f32 %v1501_v54, 0.0 }
 0x259   : > { %v1535_v58 = vpack.c.bf16 %v1527_v57, %v1526_v28  ;;  %v2213_v57 = vld [vmem:[%s3358_s8] ss:$0 sm:$0xff] }
 0x25a   : > { %v1534_v60 = vpack.c.bf16 %v1525_v31, %v1524_v21 }
 0x25c   : > { %2551 = vmatprep.mubr.bf16.mxu0 %v1534_v60 }
 0x25d   : > { %2552 = vmatmul.mubr.bf16.gmra.mrb[76].mxu0 %v1535_v58 }
 0x300   : > { %v2541_v61 = vpop.f32.mrb[64].mxu0 }
 0x301   : > { %v1650_v62 = vadd.f32 %v2541_v61, %v2204_v55  ;;  %v1641_v24 = vpop.f32.mrb[65].mxu0 }
 0x302   : > { %v1642_v63 = vadd.f32 %v2204_v55, %v1641_v24  ;;  %v2542_v0 = vpop.f32.mrb[66].mxu0 }
 0x303   : > { %v1653_v34 = vadd.f32 %v2542_v0, %v2204_v55  ;;  %v1644_v1 = vpop.f32.mrb[67].mxu0  ;;  %v1706_v4 = vmax.f32 %v1650_v62, 0.0 }
 0x304   : > { %v1645_v2 = vadd.f32 %v2204_v55, %v1644_v1  ;;  %v1704_v7 = vmax.f32 %v1642_v63, 0.0 }
 0x305   : > { %v1707_v5 = vmax.f32 %v1653_v34, 0.0 }
 0x306   : > { %v1705_v8 = vmax.f32 %v1645_v2, 0.0 }
 0x307   : > { %v1721_v9 = vpack.c.bf16 %v1707_v5, %v1706_v4 }
 0x308   : > { %v1720_v11 = vpack.c.bf16 %v1705_v8, %v1704_v7 }
 0x30a   : > { %2571 = vmatprep.mubr.bf16.mxu1 %v1720_v11 }
 0x30b   : > { %2572 = vmatmul.mubr.bf16.vlgmr.msra.gmra.mrb[64].mxu1 %v1721_v9 }
 0x310   : > { %v2545_v38 = vpop.f32.mrb[68].mxu0 }
 0x311   : > { %v1666_v12 = vadd.f32 %v2545_v38, %v2204_v55  ;;  %v1657_v14 = vpop.f32.mrb[69].mxu0 }
 0x312   : > { %v1658_v15 = vadd.f32 %v2204_v55, %v1657_v14  ;;  %v2546_v41 = vpop.f32.mrb[70].mxu0 }
 0x313   : > { %v1669_v16 = vadd.f32 %v2546_v41, %v2204_v55  ;;  %v1660_v17 = vpop.f32.mrb[71].mxu0  ;;  %v1710_v18 = vmax.f32 %v1666_v12, 0.0 }
 0x314   : > { %v1661_v49 = vadd.f32 %v2204_v55, %v1660_v17  ;;  %v1708_v20 = vmax.f32 %v1658_v15, 0.0 }
 0x315   : > { %v1711_v19 = vmax.f32 %v1669_v16, 0.0 }
 0x316   : > { %v1709_v52 = vmax.f32 %v1661_v49, 0.0 }
 0x317   : > { %v1723_v22 = vpack.c.bf16 %v1711_v19, %v1710_v18 }
 0x318   : > { %v1722_v23 = vpack.c.bf16 %v1709_v52, %v1708_v20 }
 0x31a   : > { %2575 = vmatprep.mubr.bf16.mxu1 %v1722_v23 }
 0x31b   : > { %2576 = vmatmul.mubr.bf16.gmra.mrb[68].mxu1 %v1723_v22 }
 0x320   : > { %v2549_v25 = vpop.f32.mrb[72].mxu0 }
 0x321   : > { %v1682_v56 = vadd.f32 %v2549_v25, %v2204_v55  ;;  %v1673_v26 = vpop.f32.mrb[73].mxu0 }
 0x322   : > { %v1674_v27 = vadd.f32 %v2204_v55, %v1673_v26  ;;  %v2550_v29 = vpop.f32.mrb[74].mxu0 }
 0x323   : > { %v1685_v59 = vadd.f32 %v2550_v29, %v2204_v55  ;;  %v1676_v30 = vpop.f32.mrb[75].mxu0  ;;  %v1714_v35 = vmax.f32 %v1682_v56, 0.0 }
 0x324   : > { %v1677_v32 = vadd.f32 %v2204_v55, %v1676_v30  ;;  %v1712_v3 = vmax.f32 %v1674_v27, 0.0 }
 0x325   : > { %v1715_v36 = vmax.f32 %v1685_v59, 0.0 }
 0x326   : > { %v1713_v37 = vmax.f32 %v1677_v32, 0.0 }
 0x327   : > { %v1725_v40 = vpack.c.bf16 %v1715_v36, %v1714_v35 }
 0x328   : > { %v1724_v6 = vpack.c.bf16 %v1713_v37, %v1712_v3 }
 0x32a   : > { %2579 = vmatprep.mubr.bf16.mxu1 %v1724_v6 }
 0x32b   : > { %2580 = vmatmul.mubr.bf16.gmra.mrb[72].mxu1 %v1725_v40 }
 0x330   : > { %v2553_v10 = vpop.f32.mrb[76].mxu0 }
 0x331   : > { %v1698_v33 = vadd.f32 %v2553_v10, %v2204_v55  ;;  %v1689_v42 = vpop.f32.mrb[77].mxu0 }
 0x332   : > { %v1690_v13 = vadd.f32 %v2204_v55, %v1689_v42  ;;  %v2554_v43 = vpop.f32.mrb[78].mxu0 }
 0x333   : > { %v1701_v39 = vadd.f32 %v2554_v43, %v2204_v55  ;;  %v1692_v44 = vpop.f32.mrb[79].mxu0  ;;  %v1718_v46 = vmax.f32 %v1698_v33, 0.0 }
 0x334   : > { %v1693_v45 = vadd.f32 %v2204_v55, %v1692_v44  ;;  %v1716_v50 = vmax.f32 %v1690_v13, 0.0 }
 0x335   : > { %v1719_v48 = vmax.f32 %v1701_v39, 0.0 }
 0x336   : > { %v1717_v53 = vmax.f32 %v1693_v45, 0.0 }
 0x337   : > { %v1727_v54 = vpack.c.bf16 %v1719_v48, %v1718_v46 }
 0x338   : > { %v1726_v28 = vpack.c.bf16 %v1717_v53, %v1716_v50 }
 0x33a   : > { %2583 = vmatprep.mubr.bf16.mxu1 %v1726_v28 }
 0x33b   : > { %2584 = vmatmul.mubr.bf16.gmra.mrb[76].mxu1 %v1727_v54 }
 0x3de   : > { %v2573_v21 = vpop.f32.mrb[64].mxu1 }
 0x3df   : > { %v1842_v31 = vadd.f32 %v2573_v21, %v2213_v57  ;;  %v1833_v58 = vpop.f32.mrb[65].mxu1 }
 0x3e0   : > { %v1834_v60 = vadd.f32 %v2213_v57, %v1833_v58  ;;  %v2574_v47 = vpop.f32.mrb[66].mxu1 }
 0x3e1   : > { %1900 = vmax.xlane.f32.xlu1 %v1842_v31  ;;  %v1836_v51 = vpop.f32.mrb[67].mxu1  ;;  %v1845_v55 = vadd.f32 %v2574_v47, %v2213_v57 }
 0x3e2   : > { %1896 = vmax.xlane.f32.xlu0 %v1834_v60  ;;  %v1837_v61 = vadd.f32 %v2213_v57, %v1836_v51 }
 0x3e5   : > { %1902 = vmax.xlane.f32.xlu1 %v1845_v55 }
 0x3e6   : > { %1898 = vmax.xlane.f32.xlu0 %v1837_v61 }
 0x3ee   : > { %v2577_v62 = vpop.f32.mrb[68].mxu1 }
 0x3ef   : > { %v1858_v24 = vadd.f32 %v2577_v62, %v2213_v57  ;;  %v1849_v63 = vpop.f32.mrb[69].mxu1 }
 0x3f0   : > { %v2578_v0 = vpop.f32.mrb[70].mxu1  ;;  %v1850_v2 = vadd.f32 %v2213_v57, %v1849_v63 }
 0x3f1   : > { %v1861_v34 = vadd.f32 %v2578_v0, %v2213_v57  ;;  %v1852_v1 = vpop.f32.mrb[71].mxu1  ;;  %1908 = vmax.xlane.f32.xlu0 %v1858_v24 }
 0x3f2   : > { %v1853_v4 = vadd.f32 %v2213_v57, %v1852_v1 }
 0x3f3   : > { %1910 = vmax.xlane.f32.xlu1 %v1861_v34 }
 0x3f5   : > { %1904 = vmax.xlane.f32.xlu0 %v1850_v2 }
 0x3f7   : > { %1906 = vmax.xlane.f32.xlu1 %v1853_v4 }
 0x3fe   : > { %v2581_v5 = vpop.f32.mrb[72].mxu1 }
 0x3ff   : > { %v3229_v7 = vadd.f32 %v2581_v5, %v2213_v57  ;;  %v1865_v8 = vpop.f32.mrb[73].mxu1 }
 0x400   : > { %v2582_v9 = vpop.f32.mrb[74].mxu1  ;;  %v3234_v12 = vadd.f32 %v2213_v57, %v1865_v8 }
 0x401   : > { %v3231_v11 = vadd.f32 %v2582_v9, %v2213_v57  ;;  %v1868_v38 = vpop.f32.mrb[75].mxu1  ;;  %1916 = vmax.xlane.f32.xlu0 %v3229_v7 }
 0x402   : > { %v3237_v14 = vadd.f32 %v2213_v57, %v1868_v38 }
 0x403   : > { %1918 = vmax.xlane.f32.xlu1 %v3231_v11 }
 0x405   : > { %1912 = vmax.xlane.f32.xlu0 %v3234_v12 }
 0x407   : > { %1914 = vmax.xlane.f32.xlu1 %v3237_v14 }
 0x40e   : > { %v2585_v15 = vpop.f32.mrb[76].mxu1 }
 0x40f   : > { %v1881_v41 = vpop.f32.mrb[77].mxu1  ;;  %v3246_v19 = vadd.f32 %v2585_v15, %v2213_v57 }
 0x410   : > { %v3241_v16 = vadd.f32 %v2213_v57, %v1881_v41  ;;  %v2586_v17 = vpop.f32.mrb[78].mxu1 }
 0x411   : > { %v1884_v49 = vpop.f32.mrb[79].mxu1  ;;  %v3249_v20 = vadd.f32 %v2586_v17, %v2213_v57 }
 0x412   : > { %v3243_v18 = vadd.f32 %v2213_v57, %v1884_v49  ;;  %1920 = vmax.xlane.f32.xlu0 %v3241_v16 }
 0x414   : > { %1922 = vmax.xlane.f32.xlu1 %v3243_v18 }
 0x416   : > { %1924 = vmax.xlane.f32.xlu0 %v3246_v19 }
 0x418   : > { %1926 = vmax.xlane.f32.xlu1 %v3249_v20 }
 0x46e   : > { %v1901_v52 = vpop.xlane.xlu1 %1900 }
 0x46f   : > { %v3253_v22 = vsub.f32 %v1842_v31, %v1901_v52  ;;  %v1897_v23 = vpop.xlane.xlu0 %1896 }
 0x470   : > { %v3255_v25 = vsub.f32 %v1834_v60, %v1897_v23 }
 0x471   : > { %v1948_v56 = vmul.f32 1.442695, %v3253_v22 }
 0x472   : > { %v1944_v26 = vmul.f32 1.442695, %v3255_v25  ;;  %v1903_v27 = vpop.xlane.xlu1 %1902 }
 0x473   : > { %2669 = vpow2.f32 %v1948_v56  ;;  %v3259_v29 = vsub.f32 %v1845_v55, %v1903_v27  ;;  %v1899_v59 = vpop.xlane.xlu0 %1898 }
 0x474   : > { %v3261_v30 = vsub.f32 %v1837_v61, %v1899_v59  ;;  %2671 = vpow2.f32 %v1944_v26 }
 0x475   : > { %v1950_v32 = vmul.f32 1.442695, %v3259_v29 }
 0x476   : > { %v1946_v35 = vmul.f32 1.442695, %v3261_v30 }
 0x477   : > { %2673 = vpow2.f32 %v1950_v32 }
 0x478   : > { %2675 = vpow2.f32 %v1946_v35 }
 0x47d   : > { %v2670_v36 = vpop.eup %2669 }
 0x47e   : > { %1980 = vadd.xlane.f32.xlu0 %v2670_v36  ;;  %v1909_v3 = vpop.xlane.xlu0 %1908  ;;  %v2672_v40 = vpop.eup %2671 }
 0x47f   : > { %v3265_v37 = vsub.f32 %v1858_v24, %v1909_v3 }
 0x480   : > { %v1911_v6 = vpop.xlane.xlu1 %1910 }
 0x481   : > { %v2674_v10 = vpop.eup %2673  ;;  %v1956_v33 = vmul.f32 1.442695, %v3265_v37  ;;  %v3268_v42 = vsub.f32 %v1861_v34, %v1911_v6 }
 0x482   : > { %1982 = vadd.xlane.f32.xlu1 %v2674_v10  ;;  %1976 = vadd.xlane.f32.xlu0 %v2672_v40  ;;  %v1905_v13 = vpop.xlane.xlu0 %1904  ;;  %v2676_v45 = vpop.eup %2675 }
 0x483   : > { %2677 = vpow2.f32 %v1956_v33  ;;  %v1958_v43 = vmul.f32 1.442695, %v3268_v42  ;;  %v3271_v39 = vsub.f32 %v1850_v2, %v1905_v13 }
 0x484   : > { %v1907_v44 = vpop.xlane.xlu1 %1906 }
 0x485   : > { %2679 = vpow2.f32 %v1958_v43  ;;  %v1952_v46 = vmul.f32 1.442695, %v3271_v39  ;;  %v3274_v48 = vsub.f32 %v1853_v4, %v1907_v44 }
 0x486   : > { %1978 = vadd.xlane.f32.xlu1 %v2676_v45 }
 0x487   : > { %2681 = vpow2.f32 %v1952_v46  ;;  %v1954_v50 = vmul.f32 1.442695, %v3274_v48 }
 0x489   : > { %2683 = vpow2.f32 %v1954_v50 }
 0x48d   : > { %v2678_v53 = vpop.eup %2677 }
 0x48e   : > { %1988 = vadd.xlane.f32.xlu0 %v2678_v53  ;;  %v1917_v54 = vpop.xlane.xlu0 %1916 }
 0x48f   : > { %v2680_v28 = vpop.eup %2679  ;;  %v3278_v57 = vsub.f32 %v3229_v7, %v1917_v54 }
 0x490   : > { %v1919_v21 = vpop.xlane.xlu1 %1918  ;;  %1990 = vadd.xlane.f32.xlu1 %v2680_v28 }
 0x491   : > { %v2682_v31 = vpop.eup %2681  ;;  %v1964_v58 = vmul.f32 1.442695, %v3278_v57  ;;  %v3282_v60 = vsub.f32 %v3231_v11, %v1919_v21 }
 0x492   : > { %1984 = vadd.xlane.f32.xlu0 %v2682_v31  ;;  %v1913_v47 = vpop.xlane.xlu0 %1912 }
 0x493   : > { %v2684_v51 = vpop.eup %2683  ;;  %2685 = vpow2.f32 %v1964_v58  ;;  %v1966_v55 = vmul.f32 1.442695, %v3282_v60  ;;  %v3286_v61 = vsub.f32 %v3234_v12, %v1913_v47 }
 0x494   : > { %v1915_v62 = vpop.xlane.xlu1 %1914  ;;  %1986 = vadd.xlane.f32.xlu1 %v2684_v51 }
 0x495   : > { %2687 = vpow2.f32 %v1966_v55  ;;  %v1960_v24 = vmul.f32 1.442695, %v3286_v61  ;;  %v3290_v63 = vsub.f32 %v3237_v14, %v1915_v62 }
 0x497   : > { %2689 = vpow2.f32 %v1960_v24  ;;  %v1962_v0 = vmul.f32 1.442695, %v3290_v63 }
 0x499   : > { %2691 = vpow2.f32 %v1962_v0 }
 0x49d   : > { %v2686_v34 = vpop.eup %2685 }
 0x49e   : > { %1996 = vadd.xlane.f32.xlu0 %v2686_v34 }
 0x49f   : > { %v2688_v1 = vpop.eup %2687  ;;  %v1921_v2 = vpop.xlane.xlu0 %1920 }
 0x4a0   : > { %v3294_v4 = vsub.f32 %v3241_v16, %v1921_v2  ;;  %1998 = vadd.xlane.f32.xlu1 %v2688_v1 }
 0x4a1   : > { %v2690_v5 = vpop.eup %2689  ;;  %v1923_v7 = vpop.xlane.xlu1 %1922 }
 0x4a2   : > { %v1968_v8 = vmul.f32 1.442695, %v3294_v4  ;;  %v3298_v9 = vsub.f32 %v3243_v18, %v1923_v7  ;;  %1992 = vadd.xlane.f32.xlu0 %v2690_v5 }
 0x4a3   : > { %v2692_v11 = vpop.eup %2691  ;;  %v1925_v38 = vpop.xlane.xlu0 %1924 }
 0x4a4   : > { %2693 = vpow2.f32 %v1968_v8  ;;  %v1970_v12 = vmul.f32 1.442695, %v3298_v9  ;;  %v3302_v14 = vsub.f32 %v3246_v19, %v1925_v38  ;;  %1994 = vadd.xlane.f32.xlu1 %v2692_v11 }
 0x4a5   : > { %v1927_v15 = vpop.xlane.xlu1 %1926 }
 0x4a6   : > { %2695 = vpow2.f32 %v1970_v12  ;;  %v1972_v41 = vmul.f32 1.442695, %v3302_v14  ;;  %v3306_v16 = vsub.f32 %v3249_v20, %v1927_v15 }
 0x4a8   : > { %2697 = vpow2.f32 %v1972_v41  ;;  %v1974_v17 = vmul.f32 1.442695, %v3306_v16 }
 0x4aa   : > { %2699 = vpow2.f32 %v1974_v17 }
 0x4ae   : > { %v2694_v49 = vpop.eup %2693 }
 0x4af   : > { %2000 = vadd.xlane.f32.xlu0 %v2694_v49 }
 0x4b0   : > { %v2696_v18 = vpop.eup %2695 }
 0x4b1   : > { %2002 = vadd.xlane.f32.xlu1 %v2696_v18 }
 0x4b2   : > { %v2698_v52 = vpop.eup %2697 }
 0x4b3   : > { %2004 = vadd.xlane.f32.xlu0 %v2698_v52 }
 0x4b4   : > { %v2700_v19 = vpop.eup %2699 }
 0x4b5   : > { %2006 = vadd.xlane.f32.xlu1 %v2700_v19 }
 0x50b   : > { %v1981_v23 = vpop.xlane.xlu0 %1980 }
 0x50c   : > { %2701 = vlog2.f32 %v1981_v23 }
 0x50f   : > { %v1983_v56 = vpop.xlane.xlu1 %1982  ;;  %v1977_v26 = vpop.xlane.xlu0 %1976 }
 0x510   : > { %2703 = vlog2.f32 %v1983_v56 }
 0x511   : > { %2705 = vlog2.f32 %v1977_v26 }
 0x513   : > { %v1979_v20 = vpop.xlane.xlu1 %1978 }
 0x514   : > { %2707 = vlog2.f32 %v1979_v20 }
 0x516   : > { %v2702_v27 = vpop.eup %2701 }
 0x517   : > { %v2013_v59 = vmul.f32 0.6931472, %v2702_v27 }
 0x519   : > { %v2042_v32 = vsub.f32 %v3253_v22, %v2013_v59 }
 0x51a   : > { %v2704_v35 = vpop.eup %2703 }
 0x51b   : > { %v2706_v36 = vpop.eup %2705  ;;  %2058 = vst [vmem:[%s3313_s23 + $0x10] sm:$0xff] %v2042_v32  ;;  %v2015_v3 = vmul.f32 0.6931472, %v2704_v35  ;;  %v1989_v40 = vpop.xlane.xlu0 %1988 }
 0x51c   : > { %v2009_v6 = vmul.f32 0.6931472, %v2706_v36  ;;  %2709 = vlog2.f32 %v1989_v40 }
 0x51d   : > { %v2043_v10 = vsub.f32 %v3259_v29, %v2015_v3  ;;  %v1991_v33 = vpop.xlane.xlu1 %1990 }
 0x51e   : > { %v2708_v13 = vpop.eup %2707  ;;  %v2040_v43 = vsub.f32 %v3255_v25, %v2009_v6  ;;  %2711 = vlog2.f32 %v1991_v33 }
 0x51f   : > { %2059 = vst [vmem:[%s3313_s23 + $0x18] sm:$0xff] %v2043_v10  ;;  %v2011_v44 = vmul.f32 0.6931472, %v2708_v13  ;;  %v1985_v22 = vpop.xlane.xlu0 %1984 }
 0x520   : > { %2056 = vst [vmem:[%s3313_s23] sm:$0xff] %v2040_v43  ;;  %2713 = vlog2.f32 %v1985_v22 }
 0x521   : > { %v2041_v45 = vsub.f32 %v3261_v30, %v2011_v44  ;;  %v1987_v46 = vpop.xlane.xlu1 %1986 }
 0x522   : > { %2715 = vlog2.f32 %v1987_v46 }
 0x523   : > { %2057 = vst [vmem:[%s3313_s23 + $0x8] sm:$0xff] %v2041_v45 }
 0x526   : > { %v2710_v50 = vpop.eup %2709 }
 0x527   : > { %v2021_v53 = vmul.f32 0.6931472, %v2710_v50 }
 0x528   : > { %v2712_v29 = vpop.eup %2711 }
 0x529   : > { %v2046_v54 = vsub.f32 %v3265_v37, %v2021_v53  ;;  %v2023_v25 = vmul.f32 0.6931472, %v2712_v29 }
 0x52a   : > { %v2714_v28 = vpop.eup %2713 }
 0x52b   : > { %2062 = vst [vmem:[%s3313_s23 + $0x30] sm:$0xff] %v2046_v54  ;;  %v2047_v21 = vsub.f32 %v3268_v42, %v2023_v25  ;;  %v2017_v31 = vmul.f32 0.6931472, %v2714_v28  ;;  %v1997_v58 = vpop.xlane.xlu0 %1996 }
 0x52c   : > { %v2716_v47 = vpop.eup %2715  ;;  %2717 = vlog2.f32 %v1997_v58 }
 0x52d   : > { %2063 = vst [vmem:[%s3313_s23 + $0x38] sm:$0xff] %v2047_v21  ;;  %v2044_v30 = vsub.f32 %v3271_v39, %v2017_v31  ;;  %v2019_v51 = vmul.f32 0.6931472, %v2716_v47  ;;  %v1999_v55 = vpop.xlane.xlu1 %1998 }
 0x52e   : > { %2719 = vlog2.f32 %v1999_v55 }
 0x52f   : > { %2060 = vst [vmem:[%s3313_s23 + $0x20] sm:$0xff] %v2044_v30  ;;  %v2045_v37 = vsub.f32 %v3274_v48, %v2019_v51  ;;  %v1993_v62 = vpop.xlane.xlu0 %1992 }
 0x530   : > { %2721 = vlog2.f32 %v1993_v62 }
 0x531   : > { %2061 = vst [vmem:[%s3313_s23 + $0x28] sm:$0xff] %v2045_v37  ;;  %v1995_v24 = vpop.xlane.xlu1 %1994 }
 0x532   : > { %2723 = vlog2.f32 %v1995_v24 }
 0x536   : > { %v2718_v42 = vpop.eup %2717 }
 0x537   : > { %v2029_v0 = vmul.f32 0.6931472, %v2718_v42 }
 0x538   : > { %v2720_v34 = vpop.eup %2719 }
 0x539   : > { %v2050_v1 = vsub.f32 %v3278_v57, %v2029_v0  ;;  %v2031_v39 = vmul.f32 0.6931472, %v2720_v34 }
 0x53a   : > { %v2722_v2 = vpop.eup %2721 }
 0x53b   : > { %2066 = vst [vmem:[%s3313_s23 + $0x50] sm:$0xff] %v2050_v1  ;;  %v2051_v5 = vsub.f32 %v3282_v60, %v2031_v39  ;;  %v2025_v7 = vmul.f32 0.6931472, %v2722_v2 }
 0x53c   : > { %v2724_v48 = vpop.eup %2723  ;;  %v2001_v8 = vpop.xlane.xlu0 %2000 }
 0x53d   : > { %2067 = vst [vmem:[%s3313_s23 + $0x58] sm:$0xff] %v2051_v5  ;;  %v2048_v11 = vsub.f32 %v3286_v61, %v2025_v7  ;;  %v2027_v38 = vmul.f32 0.6931472, %v2724_v48  ;;  %2725 = vlog2.f32 %v2001_v8 }
 0x53e   : > { %v2003_v12 = vpop.xlane.xlu1 %2002 }
 0x53f   : > { %2064 = vst [vmem:[%s3313_s23 + $0x40] sm:$0xff] %v2048_v11  ;;  %v2049_v15 = vsub.f32 %v3290_v63, %v2027_v38  ;;  %2727 = vlog2.f32 %v2003_v12 }
 0x540   : > { %v2005_v57 = vpop.xlane.xlu0 %2004 }
 0x541   : > { %2065 = vst [vmem:[%s3313_s23 + $0x48] sm:$0xff] %v2049_v15  ;;  %2729 = vlog2.f32 %v2005_v57 }
 0x542   : > { %v2007_v60 = vpop.xlane.xlu1 %2006 }
 0x543   : > { %2731 = vlog2.f32 %v2007_v60 }
 0x547   : > { %v2726_v41 = vpop.eup %2725 }
 0x548   : > { %v2033_v17 = vmul.f32 0.6931472, %v2726_v41 }
 0x549   : > { %v2728_v49 = vpop.eup %2727 }
 0x54a   : > { %v2052_v61 = vsub.f32 %v3294_v4, %v2033_v17  ;;  %v2035_v18 = vmul.f32 0.6931472, %v2728_v49 }
 0x54b   : > { %v2730_v52 = vpop.eup %2729 }
 0x54c   : > { %2068 = vst [vmem:[%s3313_s23 + $0x60] sm:$0xff] %v2052_v61  ;;  %v2053_v19 = vsub.f32 %v3298_v9, %v2035_v18  ;;  %v2037_v63 = vmul.f32 0.6931472, %v2730_v52 }
 0x54d   : > { %v2732_v23 = vpop.eup %2731 }
 0x54e   : > { %2069 = vst [vmem:[%s3313_s23 + $0x68] sm:$0xff] %v2053_v19  ;;  %v2054_v56 = vsub.f32 %v3302_v14, %v2037_v63  ;;  %v2039_v26 = vmul.f32 0.6931472, %v2732_v23 }
 0x550   : > { %2070 = vst [vmem:[%s3313_s23 + $0x70] sm:$0xff] %v2054_v56  ;;  %v2055_v20 = vsub.f32 %v3306_v16, %v2039_v26 }
 0x552   : > { %2071 = vst [vmem:[%s3313_s23 + $0x78] sm:$0xff] %v2055_v20 }
 0x553 PF: > { %s19_s30 = sadd.s32 1, %s2739_s30  }
 0x554   : > { %p16_p4 = scmp.ge.s32.totalorder %s19_s30, 4  }
 0x556   :  { %18 = sbr.rel (!%p16_p4) target bundleno = 1 (0x1), region = 86 }

</bundles_post_ra>
